<compile_context>
chip_gen: v7x
topology: tpu7x:2x2x1
jax: 0.10.0
libtpu: 0.0.40
codegen_flags: <defaults>
</compile_context>

<pallas_src>
import math
import functools

import jax
import jax.numpy as jnp
from jax.experimental import pallas as pl
from jax.experimental.pallas import tpu as pltpu

# ---- model hyper-params (small, consistent with the module's __init__) ----
D_MODEL = 32
NUM_HEADS = 4
D_K = D_MODEL // NUM_HEADS
D_FF = 64
LN_EPS = 1e-5


def _layernorm(x, gamma, beta):
    mu = jnp.mean(x, axis=-1, keepdims=True)
    xc = x - mu
    var = jnp.mean(xc * xc, axis=-1, keepdims=True)
    return xc * jax.lax.rsqrt(var + LN_EPS) * gamma + beta


def _mha(q_in, kv_in, wq_ref, bq_ref, wkv_ref, bkv_ref, wo_ref, bo_ref,
         bias, qkv_scr, ctx_scr, block_b, tq, tk):
    """Multi-head attention on flattened [block_b*T, D] activations.

    wq_ref:  [D, H*Dk]      (Q weights already scaled by 1/sqrt(Dk))
    bq_ref:  [1, H*Dk]
    wkv_ref: [D, 2*H*Dk]    (K | V packed along lanes, head-major)
    bkv_ref: [1, 2*H*Dk]
    wo_ref:  [H*Dk, D]      (original unsplit output projection)
    bo_ref:  [1, D]
    bias:    [tq, tk] additive mask bias (0 or -1e9), shared by all heads/batches.
             NOTE: additive bias vs. the reference's masked_fill is exact here
             because every row has at least one unmasked entry (exp underflows
             to 0 for the masked ones).
    """
    H, Dk = NUM_HEADS, D_K
    Hd = H * Dk
    Mq = block_b * tq
    Mk = block_b * tk

    # -- fused projections: one MXU matmul for Q, one for K|V ----------------
    qkv_scr[0:Mq, 0:Hd] = (
        jnp.dot(q_in, wq_ref[...], preferred_element_type=jnp.float32) + bq_ref[...])
    qkv_scr[0:Mk, Hd:3 * Hd] = (
        jnp.dot(kv_in, wkv_ref[...], preferred_element_type=jnp.float32) + bkv_ref[...])

    # -- per-(head, batch) score tiles; softmax batched over all of them -----
    tiles = []
    for h in range(H):
        for b in range(block_b):
            qb = qkv_scr[b * tq:(b + 1) * tq, h * Dk:(h + 1) * Dk]          # [tq, Dk]
            kb = qkv_scr[b * tk:(b + 1) * tk, Hd + h * Dk:Hd + (h + 1) * Dk]
            tiles.append(
                jnp.dot(qb, kb.T, preferred_element_type=jnp.float32) + bias)
    s = jnp.concatenate(tiles, axis=0) if len(tiles) > 1 else tiles[0]       # [H*bb*tq, tk]
    m = jnp.max(s, axis=-1, keepdims=True)
    p = jnp.exp(s - m)
    l = jnp.sum(p, axis=-1, keepdims=True)
    attn = p / l                      # exact divide (approx reciprocal was too lossy)

    # -- context tiles assembled lane-packed, then ONE output projection -----
    for h in range(H):
        for b in range(block_b):
            idx = h * block_b + b
            ab = attn[idx * tq:(idx + 1) * tq, :]                            # [tq, tk]
            vb = qkv_scr[b * tk:(b + 1) * tk, 2 * Hd + h * Dk:2 * Hd + (h + 1) * Dk]
            ctx_scr[b * tq:(b + 1) * tq, h * Dk:(h + 1) * Dk] = jnp.dot(
                ab, vb, preferred_element_type=jnp.float32)                  # [tq, Dk]

    out = jnp.dot(ctx_scr[0:Mq, :], wo_ref[...],
                  preferred_element_type=jnp.float32)                        # [Mq, D]
    return out + bo_ref[...]


def decoder_layer_kernel(
    x_ref, enc_ref, tbias_ref, sbias_ref,
    sa_wq, sa_bq, sa_wkv, sa_bkv, sa_wo, sa_bo,
    ca_wq, ca_bq, ca_wkv, ca_bkv, ca_wo, ca_bo,
    ff_w1, ff_b1, ff_w2, ff_b2,
    ln_g, ln_b,
    out_ref,
    qkv_scr, ctx_scr,
    *, block_b, tq, tk,
):
    x = x_ref[...]        # [block_b*tq, D]
    enc = enc_ref[...]    # [block_b*tk, D]

    g = ln_g[...]         # [3, D]
    bt = ln_b[...]        # [3, D]

    # self-attention + residual + norm1  (dropout = identity in eval mode)
    sa = _mha(x, x, sa_wq, sa_bq, sa_wkv, sa_bkv, sa_wo, sa_bo,
              tbias_ref[...], qkv_scr, ctx_scr, block_b, tq, tq)
    x = _layernorm(x + sa, g[0:1], bt[0:1])

    # cross-attention + residual + norm2
    ca = _mha(x, enc, ca_wq, ca_bq, ca_wkv, ca_bkv, ca_wo, ca_bo,
              sbias_ref[...], qkv_scr, ctx_scr, block_b, tq, tk)
    x = _layernorm(x + ca, g[1:2], bt[1:2])

    # feed-forward + residual + norm3
    h = jnp.maximum(
        jnp.dot(x, ff_w1[...], preferred_element_type=jnp.float32) + ff_b1[...], 0.0)
    ff = jnp.dot(h, ff_w2[...], preferred_element_type=jnp.float32) + ff_b2[...]
    x = _layernorm(x + ff, g[2:3], bt[2:3])

    # TODO(synk): output slab is only D=32 lanes wide (masked store); at this tiny
    # d_model a lane-dense repack would cost more XLU work than it saves.
    out_ref[...] = x


def decoder_layer(x, enc, tgt_mask, src_mask, packed_params, block_b=None):
    B, Tq, D = x.shape
    Tk = enc.shape[1]
    if block_b is None:
        block_b = B     # whole batch in one grid step; do NOT split across TCs at
                        # these sizes (latency-bound, split only pays for >=256 rows/core)
    assert B % block_b == 0
    num_blocks = B // block_b

    # flatten batch into rows so every linear / FFN matmul sees M = block_b*T rows
    x2 = x.reshape(B * Tq, D)
    enc2 = enc.reshape(B * Tk, D)

    # additive mask biases computed once outside the kernel
    tbias = jnp.where(tgt_mask == 0.0, -1e9, 0.0).astype(jnp.float32)   # [Tq, Tq]
    sbias = jnp.where(src_mask == 0.0, -1e9, 0.0).astype(jnp.float32)   # [Tq, Tk]

    def act_spec(rows):
        return pl.BlockSpec((block_b * rows, D), lambda i: (i, 0))

    def full_spec(shape):
        nd = len(shape)
        return pl.BlockSpec(shape, lambda i, _nd=nd: (0,) * _nd)

    in_specs = [act_spec(Tq), act_spec(Tk),
                full_spec(tbias.shape), full_spec(sbias.shape)]
    in_specs += [full_spec(p.shape) for p in packed_params]

    kernel = functools.partial(decoder_layer_kernel, block_b=block_b, tq=Tq, tk=Tk)

    max_rows = block_b * max(Tq, Tk)

    out2 = pl.pallas_call(
        kernel,
        out_shape=jax.ShapeDtypeStruct((B * Tq, D), jnp.float32),
        grid_spec=pltpu.PrefetchScalarGridSpec(
            num_scalar_prefetch=0,
            grid=(num_blocks,),
            in_specs=in_specs,
            out_specs=pl.BlockSpec((block_b * Tq, D), lambda i: (i, 0)),
            scratch_shapes=[
                pltpu.VMEM((max_rows, 3 * NUM_HEADS * D_K), jnp.float32),   # Q | K | V
                pltpu.VMEM((block_b * Tq, NUM_HEADS * D_K), jnp.float32),   # ctx
            ]),
        compiler_params=pltpu.CompilerParams(
            dimension_semantics=("parallel",)),
    )(x2, enc2, tbias, sbias, *packed_params)

    return out2.reshape(B, Tq, D)


# ---------------- host-side parameter packing (one-time weight transform) ----------------
def pack_params(params):
    (sa_wq, sa_bq, sa_wk, sa_bk, sa_wv, sa_bv, sa_wo, sa_bo,
     ca_wq, ca_bq, ca_wk, ca_bk, ca_wv, ca_bv, ca_wo, ca_bo,
     ff_w1, ff_b1, ff_w2, ff_b2,
     n1_g, n1_b, n2_g, n2_b, n3_g, n3_b) = params

    scale = 1.0 / math.sqrt(D_K)

    def pack_attn(wq, bq, wk, bk, wv, bv, wo, bo):
        # output columns of wq/wk/wv are already head-major (head h = cols h*Dk..);
        # fold the 1/sqrt(Dk) attention scale into the Q projection.
        wq_p = wq * scale                                 # [D, H*Dk]
        bq_p = bq * scale                                 # [1, H*Dk]
        wkv = jnp.concatenate([wk, wv], axis=1)           # [D, 2*H*Dk]
        bkv = jnp.concatenate([bk, bv], axis=1)           # [1, 2*H*Dk]
        return wq_p, bq_p, wkv, bkv, wo, bo

    sa = pack_attn(sa_wq, sa_bq, sa_wk, sa_bk, sa_wv, sa_bv, sa_wo, sa_bo)
    ca = pack_attn(ca_wq, ca_bq, ca_wk, ca_bk, ca_wv, ca_bv, ca_wo, ca_bo)
    ln_g = jnp.concatenate([n1_g, n2_g, n3_g], axis=0)    # [3, D]
    ln_b = jnp.concatenate([n1_b, n2_b, n3_b], axis=0)    # [3, D]

    return list(sa) + list(ca) + [ff_w1, ff_b1, ff_w2, ff_b2, ln_g, ln_b]


# ------------------------ pure-JAX reference (for checking) ------------------------
def reference_decoder_layer(x, enc, tgt_mask, src_mask, params):
    (sa_wq, sa_bq, sa_wk, sa_bk, sa_wv, sa_bv, sa_wo, sa_bo,
     ca_wq, ca_bq, ca_wk, ca_bk, ca_wv, ca_bv, ca_wo, ca_bo,
     ff_w1, ff_b1, ff_w2, ff_b2,
     n1_g, n1_b, n2_g, n2_b, n3_g, n3_b) = params

    def lin(z, w, b):
        return z @ w + b

    def ln(z, g, b):
        mu = jnp.mean(z, axis=-1, keepdims=True)
        var = jnp.mean((z - mu) ** 2, axis=-1, keepdims=True)
        return (z - mu) / jnp.sqrt(var + LN_EPS) * g + b

    def mha(qi, ki, vi, wq, bq, wk, bk, wv, bv, wo, bo, mask):
        Bq, T, _ = qi.shape
        S = ki.shape[1]
        q = lin(qi, wq, bq).reshape(Bq, T, NUM_HEADS, D_K).transpose(0, 2, 1, 3)
        k = lin(ki, wk, bk).reshape(Bq, S, NUM_HEADS, D_K).transpose(0, 2, 1, 3)
        v = lin(vi, wv, bv).reshape(Bq, S, NUM_HEADS, D_K).transpose(0, 2, 1, 3)
        scores = jnp.einsum("bhtd,bhsd->bhts", q, k) / math.sqrt(D_K)
        scores = jnp.where(mask[None, None] == 0.0, -1e9, scores)
        attn = jax.nn.softmax(scores, axis=-1)
        ctx = jnp.einsum("bhts,bhsd->bhtd", attn, v)
        ctx = ctx.transpose(0, 2, 1, 3).reshape(Bq, T, D_MODEL)
        return lin(ctx, wo, bo)

    h = mha(x, x, x, sa_wq, sa_bq, sa_wk, sa_bk, sa_wv, sa_bv, sa_wo, sa_bo, tgt_mask)
    x = ln(x + h, n1_g, n1_b)
    h = mha(x, enc, enc, ca_wq, ca_bq, ca_wk, ca_bk, ca_wv, ca_bv, ca_wo, ca_bo, src_mask)
    x = ln(x + h, n2_g, n2_b)
    h = lin(jnp.maximum(lin(x, ff_w1, ff_b1), 0.0), ff_w2, ff_b2)
    x = ln(x + h, n3_g, n3_b)
    return x


def init_params(key):
    keys = jax.random.split(key, 32)
    ki = iter(keys)

    def w(shape, scale):
        return jax.random.normal(next(ki), shape, jnp.float32) * scale

    s_d = 1.0 / math.sqrt(D_MODEL)
    s_f = 1.0 / math.sqrt(D_FF)

    params = []
    # self-attention: q/k/v/out linears (weights stored as [in, out])
    for _ in range(4):
        params += [w((D_MODEL, D_MODEL), s_d), w((1, D_MODEL), s_d)]
    # cross-attention
    for _ in range(4):
        params += [w((D_MODEL, D_MODEL), s_d), w((1, D_MODEL), s_d)]
    # feed-forward
    params += [w((D_MODEL, D_FF), s_d), w((1, D_FF), s_d),
               w((D_FF, D_MODEL), s_f), w((1, D_MODEL), s_f)]
    # layer norms: gamma=1, beta=0 (PyTorch default init)
    for _ in range(3):
        params += [jnp.ones((1, D_MODEL), jnp.float32),
                   jnp.zeros((1, D_MODEL), jnp.float32)]
    return params


if __name__ == "__main__":
    B, TQ, TK = 2, 8, 8
    key = jax.random.PRNGKey(0)
    kx, kenc, kp = jax.random.split(key, 3)

    x = jax.random.normal(kx, (B, TQ, D_MODEL), jnp.float32)
    enc = jax.random.normal(kenc, (B, TK, D_MODEL), jnp.float32)
    tgt_mask = jnp.tril(jnp.ones((TQ, TQ), jnp.float32))   # causal mask
    src_mask = jnp.ones((TQ, TK), jnp.float32)             # full visibility

    params = init_params(kp)
    packed = pack_params(params)

    out = decoder_layer(x, enc, tgt_mask, src_mask, packed)
    out = jax.block_until_ready(out)

    ref = reference_decoder_layer(x, enc, tgt_mask, src_mask, params)
    assert out.shape == (B, TQ, D_MODEL)
    max_err = float(jnp.max(jnp.abs(out - ref)))
    assert jnp.allclose(out, ref, rtol=1e-4, atol=1e-4), \
        f"mismatch vs reference (max err {max_err})"

    print("KERNEL_OK")
</pallas_src>

<mosaic_0001>
module attributes {stable_mosaic.version = 11 : i64} {
  func.func @decoder_layer_kernel(%arg0: i32, %arg1: memref<16x32xf32, #tpu.memory_space<vmem>>, %arg2: memref<16x32xf32, #tpu.memory_space<vmem>>, %arg3: memref<8x8xf32, #tpu.memory_space<vmem>>, %arg4: memref<8x8xf32, #tpu.memory_space<vmem>>, %arg5: memref<32x32xf32, #tpu.memory_space<vmem>>, %arg6: memref<1x32xf32, #tpu.memory_space<vmem>>, %arg7: memref<32x64xf32, #tpu.memory_space<vmem>>, %arg8: memref<1x64xf32, #tpu.memory_space<vmem>>, %arg9: memref<32x32xf32, #tpu.memory_space<vmem>>, %arg10: memref<1x32xf32, #tpu.memory_space<vmem>>, %arg11: memref<32x32xf32, #tpu.memory_space<vmem>>, %arg12: memref<1x32xf32, #tpu.memory_space<vmem>>, %arg13: memref<32x64xf32, #tpu.memory_space<vmem>>, %arg14: memref<1x64xf32, #tpu.memory_space<vmem>>, %arg15: memref<32x32xf32, #tpu.memory_space<vmem>>, %arg16: memref<1x32xf32, #tpu.memory_space<vmem>>, %arg17: memref<32x64xf32, #tpu.memory_space<vmem>>, %arg18: memref<1x64xf32, #tpu.memory_space<vmem>>, %arg19: memref<64x32xf32, #tpu.memory_space<vmem>>, %arg20: memref<1x32xf32, #tpu.memory_space<vmem>>, %arg21: memref<3x32xf32, #tpu.memory_space<vmem>>, %arg22: memref<3x32xf32, #tpu.memory_space<vmem>>, %arg23: memref<16x32xf32, #tpu.memory_space<vmem>>, %arg24: memref<16x96xf32, #tpu.memory_space<vmem>>, %arg25: memref<16x32xf32, #tpu.memory_space<vmem>>) attributes {dimension_semantics = [#tpu.dimension_semantics<parallel>], iteration_bounds = array<i64: 1>, scalar_prefetch = 0 : i64, scratch_operands = 2 : i64, tpu.core_type = #tpu.core_type<tc>, window_params = [{transform_indices = @transform_0, window_bounds = array<i64: 16, 32>}, {transform_indices = @transform_1, window_bounds = array<i64: 16, 32>}, {pipeline_mode = #tpu.pipeline_mode<synchronous>, transform_indices = @transform_2, window_bounds = array<i64: 8, 8>}, {pipeline_mode = #tpu.pipeline_mode<synchronous>, transform_indices = @transform_3, window_bounds = array<i64: 8, 8>}, {pipeline_mode = #tpu.pipeline_mode<synchronous>, transform_indices = @transform_4, window_bounds = array<i64: 32, 32>}, {pipeline_mode = #tpu.pipeline_mode<synchronous>, transform_indices = @transform_5, window_bounds = array<i64: 1, 32>}, {pipeline_mode = #tpu.pipeline_mode<synchronous>, transform_indices = @transform_6, window_bounds = array<i64: 32, 64>}, {pipeline_mode = #tpu.pipeline_mode<synchronous>, transform_indices = @transform_7, window_bounds = array<i64: 1, 64>}, {pipeline_mode = #tpu.pipeline_mode<synchronous>, transform_indices = @transform_8, window_bounds = array<i64: 32, 32>}, {pipeline_mode = #tpu.pipeline_mode<synchronous>, transform_indices = @transform_9, window_bounds = array<i64: 1, 32>}, {pipeline_mode = #tpu.pipeline_mode<synchronous>, transform_indices = @transform_10, window_bounds = array<i64: 32, 32>}, {pipeline_mode = #tpu.pipeline_mode<synchronous>, transform_indices = @transform_11, window_bounds = array<i64: 1, 32>}, {pipeline_mode = #tpu.pipeline_mode<synchronous>, transform_indices = @transform_12, window_bounds = array<i64: 32, 64>}, {pipeline_mode = #tpu.pipeline_mode<synchronous>, transform_indices = @transform_13, window_bounds = array<i64: 1, 64>}, {pipeline_mode = #tpu.pipeline_mode<synchronous>, transform_indices = @transform_14, window_bounds = array<i64: 32, 32>}, {pipeline_mode = #tpu.pipeline_mode<synchronous>, transform_indices = @transform_15, window_bounds = array<i64: 1, 32>}, {pipeline_mode = #tpu.pipeline_mode<synchronous>, transform_indices = @transform_16, window_bounds = array<i64: 32, 64>}, {pipeline_mode = #tpu.pipeline_mode<synchronous>, transform_indices = @transform_17, window_bounds = array<i64: 1, 64>}, {pipeline_mode = #tpu.pipeline_mode<synchronous>, transform_indices = @transform_18, window_bounds = array<i64: 64, 32>}, {pipeline_mode = #tpu.pipeline_mode<synchronous>, transform_indices = @transform_19, window_bounds = array<i64: 1, 32>}, {pipeline_mode = #tpu.pipeline_mode<synchronous>, transform_indices = @transform_20, window_bounds = array<i64: 3, 32>}, {pipeline_mode = #tpu.pipeline_mode<synchronous>, transform_indices = @transform_21, window_bounds = array<i64: 3, 32>}, {transform_indices = @transform_22, window_bounds = array<i64: 16, 32>}]} {
    %c0 = arith.constant 0 : index
    %c0_0 = arith.constant 0 : index
    %0 = vector.load %arg1[%c0, %c0_0] : memref<16x32xf32, #tpu.memory_space<vmem>>, vector<16x32xf32>
    %c0_1 = arith.constant 0 : index
    %c0_2 = arith.constant 0 : index
    %1 = vector.load %arg2[%c0_1, %c0_2] : memref<16x32xf32, #tpu.memory_space<vmem>>, vector<16x32xf32>
    %c0_3 = arith.constant 0 : index
    %c0_4 = arith.constant 0 : index
    %2 = vector.load %arg21[%c0_3, %c0_4] : memref<3x32xf32, #tpu.memory_space<vmem>>, vector<3x32xf32>
    %c0_5 = arith.constant 0 : index
    %c0_6 = arith.constant 0 : index
    %3 = vector.load %arg22[%c0_5, %c0_6] : memref<3x32xf32, #tpu.memory_space<vmem>>, vector<3x32xf32>
    %c0_7 = arith.constant 0 : index
    %c0_8 = arith.constant 0 : index
    %4 = vector.load %arg3[%c0_7, %c0_8] : memref<8x8xf32, #tpu.memory_space<vmem>>, vector<8x8xf32>
    %c0_9 = arith.constant 0 : index
    %c0_10 = arith.constant 0 : index
    %5 = vector.load %arg5[%c0_9, %c0_10] : memref<32x32xf32, #tpu.memory_space<vmem>>, vector<32x32xf32>
    %cst = arith.constant dense<0.000000e+00> : vector<16x32xf32>
    %6 = tpu.matmul %0, %5, %cst {dimension_numbers = #tpu.dot_dimension_numbers<[1], [0], [0], [1], [0, 0, 1, 1], [], []>} : vector<16x32xf32>, vector<32x32xf32>, vector<16x32xf32> -> vector<16x32xf32>
    %c0_11 = arith.constant 0 : index
    %c0_12 = arith.constant 0 : index
    %7 = vector.load %arg6[%c0_11, %c0_12] : memref<1x32xf32, #tpu.memory_space<vmem>>, vector<1x32xf32>
    %8 = vector.broadcast %7 : vector<1x32xf32> to vector<16x32xf32>
    %9 = arith.addf %6, %8 : vector<16x32xf32>
    %c0_13 = arith.constant 0 : index
    %c0_14 = arith.constant 0 : index
    %10 = vector.load %arg24[%c0_13, %c0_14] : memref<16x96xf32, #tpu.memory_space<vmem>>, vector<16x32xf32>
    tpu.vector_store %arg24[%c0_13, %c0_14], %9 {strides = array<i32>} : memref<16x96xf32, #tpu.memory_space<vmem>>, vector<16x32xf32>,
    %c0_15 = arith.constant 0 : index
    %c0_16 = arith.constant 0 : index
    %11 = vector.load %arg7[%c0_15, %c0_16] : memref<32x64xf32, #tpu.memory_space<vmem>>, vector<32x64xf32>
    %cst_17 = arith.constant dense<0.000000e+00> : vector<16x64xf32>
    %12 = tpu.matmul %0, %11, %cst_17 {dimension_numbers = #tpu.dot_dimension_numbers<[1], [0], [0], [1], [0, 0, 1, 1], [], []>} : vector<16x32xf32>, vector<32x64xf32>, vector<16x64xf32> -> vector<16x64xf32>
    %c0_18 = arith.constant 0 : index
    %c0_19 = arith.constant 0 : index
    %13 = vector.load %arg8[%c0_18, %c0_19] : memref<1x64xf32, #tpu.memory_space<vmem>>, vector<1x64xf32>
    %14 = vector.broadcast %13 : vector<1x64xf32> to vector<16x64xf32>
    %15 = arith.addf %12, %14 : vector<16x64xf32>
    %c0_20 = arith.constant 0 : index
    %c32 = arith.constant 32 : index
    %16 = vector.load %arg24[%c0_20, %c32] : memref<16x96xf32, #tpu.memory_space<vmem>>, vector<16x64xf32>
    tpu.vector_store %arg24[%c0_20, %c32], %15 {strides = array<i32>} : memref<16x96xf32, #tpu.memory_space<vmem>>, vector<16x64xf32>,
    %c0_21 = arith.constant 0 : index
    %c0_22 = arith.constant 0 : index
    %17 = vector.load %arg24[%c0_21, %c0_22] : memref<16x96xf32, #tpu.memory_space<vmem>>, vector<8x8xf32>
    %c0_23 = arith.constant 0 : index
    %c32_24 = arith.constant 32 : index
    %18 = vector.load %arg24[%c0_23, %c32_24] : memref<16x96xf32, #tpu.memory_space<vmem>>, vector<8x8xf32>
    %19 = tpu.transpose %18, [1, 0] : vector<8x8xf32> -> vector<8x8xf32>
    %cst_25 = arith.constant dense<0.000000e+00> : vector<8x8xf32>
    %20 = tpu.matmul %17, %19, %cst_25 {dimension_numbers = #tpu.dot_dimension_numbers<[1], [0], [0], [1], [0, 0, 1, 1], [], []>} : vector<8x8xf32>, vector<8x8xf32>, vector<8x8xf32> -> vector<8x8xf32>
    %21 = arith.addf %20, %4 : vector<8x8xf32>
    %c8 = arith.constant 8 : index
    %c0_26 = arith.constant 0 : index
    %22 = vector.load %arg24[%c8, %c0_26] : memref<16x96xf32, #tpu.memory_space<vmem>>, vector<8x8xf32>
    %c8_27 = arith.constant 8 : index
    %c32_28 = arith.constant 32 : index
    %23 = vector.load %arg24[%c8_27, %c32_28] : memref<16x96xf32, #tpu.memory_space<vmem>>, vector<8x8xf32>
    %24 = tpu.transpose %23, [1, 0] : vector<8x8xf32> -> vector<8x8xf32>
    %cst_29 = arith.constant dense<0.000000e+00> : vector<8x8xf32>
    %25 = tpu.matmul %22, %24, %cst_29 {dimension_numbers = #tpu.dot_dimension_numbers<[1], [0], [0], [1], [0, 0, 1, 1], [], []>} : vector<8x8xf32>, vector<8x8xf32>, vector<8x8xf32> -> vector<8x8xf32>
    %26 = arith.addf %25, %4 : vector<8x8xf32>
    %c0_30 = arith.constant 0 : index
    %c8_31 = arith.constant 8 : index
    %27 = vector.load %arg24[%c0_30, %c8_31] : memref<16x96xf32, #tpu.memory_space<vmem>>, vector<8x8xf32>
    %c0_32 = arith.constant 0 : index
    %c40 = arith.constant 40 : index
    %28 = vector.load %arg24[%c0_32, %c40] : memref<16x96xf32, #tpu.memory_space<vmem>>, vector<8x8xf32>
    %29 = tpu.transpose %28, [1, 0] : vector<8x8xf32> -> vector<8x8xf32>
    %cst_33 = arith.constant dense<0.000000e+00> : vector<8x8xf32>
    %30 = tpu.matmul %27, %29, %cst_33 {dimension_numbers = #tpu.dot_dimension_numbers<[1], [0], [0], [1], [0, 0, 1, 1], [], []>} : vector<8x8xf32>, vector<8x8xf32>, vector<8x8xf32> -> vector<8x8xf32>
    %31 = arith.addf %30, %4 : vector<8x8xf32>
    %c8_34 = arith.constant 8 : index
    %c8_35 = arith.constant 8 : index
    %32 = vector.load %arg24[%c8_34, %c8_35] : memref<16x96xf32, #tpu.memory_space<vmem>>, vector<8x8xf32>
    %c8_36 = arith.constant 8 : index
    %c40_37 = arith.constant 40 : index
    %33 = vector.load %arg24[%c8_36, %c40_37] : memref<16x96xf32, #tpu.memory_space<vmem>>, vector<8x8xf32>
    %34 = tpu.transpose %33, [1, 0] : vector<8x8xf32> -> vector<8x8xf32>
    %cst_38 = arith.constant dense<0.000000e+00> : vector<8x8xf32>
    %35 = tpu.matmul %32, %34, %cst_38 {dimension_numbers = #tpu.dot_dimension_numbers<[1], [0], [0], [1], [0, 0, 1, 1], [], []>} : vector<8x8xf32>, vector<8x8xf32>, vector<8x8xf32> -> vector<8x8xf32>
    %36 = arith.addf %35, %4 : vector<8x8xf32>
    %c0_39 = arith.constant 0 : index
    %c16 = arith.constant 16 : index
    %37 = vector.load %arg24[%c0_39, %c16] : memref<16x96xf32, #tpu.memory_space<vmem>>, vector<8x8xf32>
    %c0_40 = arith.constant 0 : index
    %c48 = arith.constant 48 : index
    %38 = vector.load %arg24[%c0_40, %c48] : memref<16x96xf32, #tpu.memory_space<vmem>>, vector<8x8xf32>
    %39 = tpu.transpose %38, [1, 0] : vector<8x8xf32> -> vector<8x8xf32>
    %cst_41 = arith.constant dense<0.000000e+00> : vector<8x8xf32>
    %40 = tpu.matmul %37, %39, %cst_41 {dimension_numbers = #tpu.dot_dimension_numbers<[1], [0], [0], [1], [0, 0, 1, 1], [], []>} : vector<8x8xf32>, vector<8x8xf32>, vector<8x8xf32> -> vector<8x8xf32>
    %41 = arith.addf %40, %4 : vector<8x8xf32>
    %c8_42 = arith.constant 8 : index
    %c16_43 = arith.constant 16 : index
    %42 = vector.load %arg24[%c8_42, %c16_43] : memref<16x96xf32, #tpu.memory_space<vmem>>, vector<8x8xf32>
    %c8_44 = arith.constant 8 : index
    %c48_45 = arith.constant 48 : index
    %43 = vector.load %arg24[%c8_44, %c48_45] : memref<16x96xf32, #tpu.memory_space<vmem>>, vector<8x8xf32>
    %44 = tpu.transpose %43, [1, 0] : vector<8x8xf32> -> vector<8x8xf32>
    %cst_46 = arith.constant dense<0.000000e+00> : vector<8x8xf32>
    %45 = tpu.matmul %42, %44, %cst_46 {dimension_numbers = #tpu.dot_dimension_numbers<[1], [0], [0], [1], [0, 0, 1, 1], [], []>} : vector<8x8xf32>, vector<8x8xf32>, vector<8x8xf32> -> vector<8x8xf32>
    %46 = arith.addf %45, %4 : vector<8x8xf32>
    %c0_47 = arith.constant 0 : index
    %c24 = arith.constant 24 : index
    %47 = vector.load %arg24[%c0_47, %c24] : memref<16x96xf32, #tpu.memory_space<vmem>>, vector<8x8xf32>
    %c0_48 = arith.constant 0 : index
    %c56 = arith.constant 56 : index
    %48 = vector.load %arg24[%c0_48, %c56] : memref<16x96xf32, #tpu.memory_space<vmem>>, vector<8x8xf32>
    %49 = tpu.transpose %48, [1, 0] : vector<8x8xf32> -> vector<8x8xf32>
    %cst_49 = arith.constant dense<0.000000e+00> : vector<8x8xf32>
    %50 = tpu.matmul %47, %49, %cst_49 {dimension_numbers = #tpu.dot_dimension_numbers<[1], [0], [0], [1], [0, 0, 1, 1], [], []>} : vector<8x8xf32>, vector<8x8xf32>, vector<8x8xf32> -> vector<8x8xf32>
    %51 = arith.addf %50, %4 : vector<8x8xf32>
    %c8_50 = arith.constant 8 : index
    %c24_51 = arith.constant 24 : index
    %52 = vector.load %arg24[%c8_50, %c24_51] : memref<16x96xf32, #tpu.memory_space<vmem>>, vector<8x8xf32>
    %c8_52 = arith.constant 8 : index
    %c56_53 = arith.constant 56 : index
    %53 = vector.load %arg24[%c8_52, %c56_53] : memref<16x96xf32, #tpu.memory_space<vmem>>, vector<8x8xf32>
    %54 = tpu.transpose %53, [1, 0] : vector<8x8xf32> -> vector<8x8xf32>
    %cst_54 = arith.constant dense<0.000000e+00> : vector<8x8xf32>
    %55 = tpu.matmul %52, %54, %cst_54 {dimension_numbers = #tpu.dot_dimension_numbers<[1], [0], [0], [1], [0, 0, 1, 1], [], []>} : vector<8x8xf32>, vector<8x8xf32>, vector<8x8xf32> -> vector<8x8xf32>
    %56 = arith.addf %55, %4 : vector<8x8xf32>
    %57 = tpu.concatenate %21, %26, %31, %36, %41, %46, %51, %56 in 0 : vector<8x8xf32>, vector<8x8xf32>, vector<8x8xf32>, vector<8x8xf32>, vector<8x8xf32>, vector<8x8xf32>, vector<8x8xf32>, vector<8x8xf32> -> vector<64x8xf32>
    %cst_55 = arith.constant dense<0xFF800000> : vector<64xf32>
    %58 = vector.multi_reduction <maximumf>, %57, %cst_55 [1] : vector<64x8xf32> to vector<64xf32>
    %59 = vector.shape_cast %58 : vector<64xf32> to vector<64x1xf32>
    %60 = vector.broadcast %59 : vector<64x1xf32> to vector<64x8xf32>
    %61 = arith.subf %57, %60 : vector<64x8xf32>
    %62 = math.exp %61 : vector<64x8xf32>
    %cst_56 = arith.constant dense<0.000000e+00> : vector<64xf32>
    %63 = vector.multi_reduction <add>, %62, %cst_56 [1] : vector<64x8xf32> to vector<64xf32>
    %64 = vector.shape_cast %63 : vector<64xf32> to vector<64x1xf32>
    %65 = vector.broadcast %64 : vector<64x1xf32> to vector<64x8xf32>
    %66 = arith.divf %62, %65 : vector<64x8xf32>
    %67 = vector.extract_strided_slice %66 {offsets = [0, 0], sizes = [8, 8], strides = [1, 1]} : vector<64x8xf32> to vector<8x8xf32>
    %c0_57 = arith.constant 0 : index
    %c64 = arith.constant 64 : index
    %68 = vector.load %arg24[%c0_57, %c64] : memref<16x96xf32, #tpu.memory_space<vmem>>, vector<8x8xf32>
    %cst_58 = arith.constant dense<0.000000e+00> : vector<8x8xf32>
    %69 = tpu.matmul %67, %68, %cst_58 {dimension_numbers = #tpu.dot_dimension_numbers<[1], [0], [0], [1], [0, 0, 1, 1], [], []>} : vector<8x8xf32>, vector<8x8xf32>, vector<8x8xf32> -> vector<8x8xf32>
    %c0_59 = arith.constant 0 : index
    %c0_60 = arith.constant 0 : index
    %70 = vector.load %arg25[%c0_59, %c0_60] : memref<16x32xf32, #tpu.memory_space<vmem>>, vector<8x8xf32>
    tpu.vector_store %arg25[%c0_59, %c0_60], %69 {strides = array<i32>} : memref<16x32xf32, #tpu.memory_space<vmem>>, vector<8x8xf32>,
    %71 = vector.extract_strided_slice %66 {offsets = [8, 0], sizes = [8, 8], strides = [1, 1]} : vector<64x8xf32> to vector<8x8xf32>
    %c8_61 = arith.constant 8 : index
    %c64_62 = arith.constant 64 : index
    %72 = vector.load %arg24[%c8_61, %c64_62] : memref<16x96xf32, #tpu.memory_space<vmem>>, vector<8x8xf32>
    %cst_63 = arith.constant dense<0.000000e+00> : vector<8x8xf32>
    %73 = tpu.matmul %71, %72, %cst_63 {dimension_numbers = #tpu.dot_dimension_numbers<[1], [0], [0], [1], [0, 0, 1, 1], [], []>} : vector<8x8xf32>, vector<8x8xf32>, vector<8x8xf32> -> vector<8x8xf32>
    %c8_64 = arith.constant 8 : index
    %c0_65 = arith.constant 0 : index
    %74 = vector.load %arg25[%c8_64, %c0_65] : memref<16x32xf32, #tpu.memory_space<vmem>>, vector<8x8xf32>
    tpu.vector_store %arg25[%c8_64, %c0_65], %73 {strides = array<i32>} : memref<16x32xf32, #tpu.memory_space<vmem>>, vector<8x8xf32>,
    %75 = vector.extract_strided_slice %66 {offsets = [16, 0], sizes = [8, 8], strides = [1, 1]} : vector<64x8xf32> to vector<8x8xf32>
    %c0_66 = arith.constant 0 : index
    %c72 = arith.constant 72 : index
    %76 = vector.load %arg24[%c0_66, %c72] : memref<16x96xf32, #tpu.memory_space<vmem>>, vector<8x8xf32>
    %cst_67 = arith.constant dense<0.000000e+00> : vector<8x8xf32>
    %77 = tpu.matmul %75, %76, %cst_67 {dimension_numbers = #tpu.dot_dimension_numbers<[1], [0], [0], [1], [0, 0, 1, 1], [], []>} : vector<8x8xf32>, vector<8x8xf32>, vector<8x8xf32> -> vector<8x8xf32>
    %c0_68 = arith.constant 0 : index
    %c8_69 = arith.constant 8 : index
    %78 = vector.load %arg25[%c0_68, %c8_69] : memref<16x32xf32, #tpu.memory_space<vmem>>, vector<8x8xf32>
    tpu.vector_store %arg25[%c0_68, %c8_69], %77 {strides = array<i32>} : memref<16x32xf32, #tpu.memory_space<vmem>>, vector<8x8xf32>,
    %79 = vector.extract_strided_slice %66 {offsets = [24, 0], sizes = [8, 8], strides = [1, 1]} : vector<64x8xf32> to vector<8x8xf32>
    %c8_70 = arith.constant 8 : index
    %c72_71 = arith.constant 72 : index
    %80 = vector.load %arg24[%c8_70, %c72_71] : memref<16x96xf32, #tpu.memory_space<vmem>>, vector<8x8xf32>
    %cst_72 = arith.constant dense<0.000000e+00> : vector<8x8xf32>
    %81 = tpu.matmul %79, %80, %cst_72 {dimension_numbers = #tpu.dot_dimension_numbers<[1], [0], [0], [1], [0, 0, 1, 1], [], []>} : vector<8x8xf32>, vector<8x8xf32>, vector<8x8xf32> -> vector<8x8xf32>
    %c8_73 = arith.constant 8 : index
    %c8_74 = arith.constant 8 : index
    %82 = vector.load %arg25[%c8_73, %c8_74] : memref<16x32xf32, #tpu.memory_space<vmem>>, vector<8x8xf32>
    tpu.vector_store %arg25[%c8_73, %c8_74], %81 {strides = array<i32>} : memref<16x32xf32, #tpu.memory_space<vmem>>, vector<8x8xf32>,
    %83 = vector.extract_strided_slice %66 {offsets = [32, 0], sizes = [8, 8], strides = [1, 1]} : vector<64x8xf32> to vector<8x8xf32>
    %c0_75 = arith.constant 0 : index
    %c80 = arith.constant 80 : index
    %84 = vector.load %arg24[%c0_75, %c80] : memref<16x96xf32, #tpu.memory_space<vmem>>, vector<8x8xf32>
    %cst_76 = arith.constant dense<0.000000e+00> : vector<8x8xf32>
    %85 = tpu.matmul %83, %84, %cst_76 {dimension_numbers = #tpu.dot_dimension_numbers<[1], [0], [0], [1], [0, 0, 1, 1], [], []>} : vector<8x8xf32>, vector<8x8xf32>, vector<8x8xf32> -> vector<8x8xf32>
    %c0_77 = arith.constant 0 : index
    %c16_78 = arith.constant 16 : index
    %86 = vector.load %arg25[%c0_77, %c16_78] : memref<16x32xf32, #tpu.memory_space<vmem>>, vector<8x8xf32>
    tpu.vector_store %arg25[%c0_77, %c16_78], %85 {strides = array<i32>} : memref<16x32xf32, #tpu.memory_space<vmem>>, vector<8x8xf32>,
    %87 = vector.extract_strided_slice %66 {offsets = [40, 0], sizes = [8, 8], strides = [1, 1]} : vector<64x8xf32> to vector<8x8xf32>
    %c8_79 = arith.constant 8 : index
    %c80_80 = arith.constant 80 : index
    %88 = vector.load %arg24[%c8_79, %c80_80] : memref<16x96xf32, #tpu.memory_space<vmem>>, vector<8x8xf32>
    %cst_81 = arith.constant dense<0.000000e+00> : vector<8x8xf32>
    %89 = tpu.matmul %87, %88, %cst_81 {dimension_numbers = #tpu.dot_dimension_numbers<[1], [0], [0], [1], [0, 0, 1, 1], [], []>} : vector<8x8xf32>, vector<8x8xf32>, vector<8x8xf32> -> vector<8x8xf32>
    %c8_82 = arith.constant 8 : index
    %c16_83 = arith.constant 16 : index
    %90 = vector.load %arg25[%c8_82, %c16_83] : memref<16x32xf32, #tpu.memory_space<vmem>>, vector<8x8xf32>
    tpu.vector_store %arg25[%c8_82, %c16_83], %89 {strides = array<i32>} : memref<16x32xf32, #tpu.memory_space<vmem>>, vector<8x8xf32>,
    %91 = vector.extract_strided_slice %66 {offsets = [48, 0], sizes = [8, 8], strides = [1, 1]} : vector<64x8xf32> to vector<8x8xf32>
    %c0_84 = arith.constant 0 : index
    %c88 = arith.constant 88 : index
    %92 = vector.load %arg24[%c0_84, %c88] : memref<16x96xf32, #tpu.memory_space<vmem>>, vector<8x8xf32>
    %cst_85 = arith.constant dense<0.000000e+00> : vector<8x8xf32>
    %93 = tpu.matmul %91, %92, %cst_85 {dimension_numbers = #tpu.dot_dimension_numbers<[1], [0], [0], [1], [0, 0, 1, 1], [], []>} : vector<8x8xf32>, vector<8x8xf32>, vector<8x8xf32> -> vector<8x8xf32>
    %c0_86 = arith.constant 0 : index
    %c24_87 = arith.constant 24 : index
    %94 = vector.load %arg25[%c0_86, %c24_87] : memref<16x32xf32, #tpu.memory_space<vmem>>, vector<8x8xf32>
    tpu.vector_store %arg25[%c0_86, %c24_87], %93 {strides = array<i32>} : memref<16x32xf32, #tpu.memory_space<vmem>>, vector<8x8xf32>,
    %95 = vector.extract_strided_slice %66 {offsets = [56, 0], sizes = [8, 8], strides = [1, 1]} : vector<64x8xf32> to vector<8x8xf32>
    %c8_88 = arith.constant 8 : index
    %c88_89 = arith.constant 88 : index
    %96 = vector.load %arg24[%c8_88, %c88_89] : memref<16x96xf32, #tpu.memory_space<vmem>>, vector<8x8xf32>
    %cst_90 = arith.constant dense<0.000000e+00> : vector<8x8xf32>
    %97 = tpu.matmul %95, %96, %cst_90 {dimension_numbers = #tpu.dot_dimension_numbers<[1], [0], [0], [1], [0, 0, 1, 1], [], []>} : vector<8x8xf32>, vector<8x8xf32>, vector<8x8xf32> -> vector<8x8xf32>
    %c8_91 = arith.constant 8 : index
    %c24_92 = arith.constant 24 : index
    %98 = vector.load %arg25[%c8_91, %c24_92] : memref<16x32xf32, #tpu.memory_space<vmem>>, vector<8x8xf32>
    tpu.vector_store %arg25[%c8_91, %c24_92], %97 {strides = array<i32>} : memref<16x32xf32, #tpu.memory_space<vmem>>, vector<8x8xf32>,
    %c0_93 = arith.constant 0 : index
    %c0_94 = arith.constant 0 : index
    %99 = vector.load %arg25[%c0_93, %c0_94] : memref<16x32xf32, #tpu.memory_space<vmem>>, vector<16x32xf32>
    %c0_95 = arith.constant 0 : index
    %c0_96 = arith.constant 0 : index
    %100 = vector.load %arg9[%c0_95, %c0_96] : memref<32x32xf32, #tpu.memory_space<vmem>>, vector<32x32xf32>
    %cst_97 = arith.constant dense<0.000000e+00> : vector<16x32xf32>
    %101 = tpu.matmul %99, %100, %cst_97 {dimension_numbers = #tpu.dot_dimension_numbers<[1], [0], [0], [1], [0, 0, 1, 1], [], []>} : vector<16x32xf32>, vector<32x32xf32>, vector<16x32xf32> -> vector<16x32xf32>
    %c0_98 = arith.constant 0 : index
    %c0_99 = arith.constant 0 : index
    %102 = vector.load %arg10[%c0_98, %c0_99] : memref<1x32xf32, #tpu.memory_space<vmem>>, vector<1x32xf32>
    %103 = vector.broadcast %102 : vector<1x32xf32> to vector<16x32xf32>
    %104 = arith.addf %101, %103 : vector<16x32xf32>
    %105 = arith.addf %0, %104 : vector<16x32xf32>
    %106 = vector.extract_strided_slice %2 {offsets = [0, 0], sizes = [1, 32], strides = [1, 1]} : vector<3x32xf32> to vector<1x32xf32>
    %107 = vector.extract_strided_slice %3 {offsets = [0, 0], sizes = [1, 32], strides = [1, 1]} : vector<3x32xf32> to vector<1x32xf32>
    %cst_100 = arith.constant dense<0.000000e+00> : vector<16xf32>
    %108 = vector.multi_reduction <add>, %105, %cst_100 [1] : vector<16x32xf32> to vector<16xf32>
    %109 = vector.shape_cast %108 : vector<16xf32> to vector<16x1xf32>
    %cst_101 = arith.constant 3.200000e+01 : f32
    %110 = vector.broadcast %cst_101 : f32 to vector<16x1xf32>
    %111 = arith.divf %109, %110 : vector<16x1xf32>
    %112 = vector.broadcast %111 : vector<16x1xf32> to vector<16x32xf32>
    %113 = arith.subf %105, %112 : vector<16x32xf32>
    %114 = arith.mulf %113, %113 : vector<16x32xf32>
    %cst_102 = arith.constant dense<0.000000e+00> : vector<16xf32>
    %115 = vector.multi_reduction <add>, %114, %cst_102 [1] : vector<16x32xf32> to vector<16xf32>
    %116 = vector.shape_cast %115 : vector<16xf32> to vector<16x1xf32>
    %cst_103 = arith.constant 3.200000e+01 : f32
    %117 = vector.broadcast %cst_103 : f32 to vector<16x1xf32>
    %118 = arith.divf %116, %117 : vector<16x1xf32>
    %cst_104 = arith.constant 9.99999974E-6 : f32
    %119 = vector.broadcast %cst_104 : f32 to vector<16x1xf32>
    %120 = arith.addf %118, %119 : vector<16x1xf32>
    %121 = math.rsqrt %120 : vector<16x1xf32>
    %122 = vector.broadcast %121 : vector<16x1xf32> to vector<16x32xf32>
    %123 = arith.mulf %113, %122 : vector<16x32xf32>
    %124 = vector.broadcast %106 : vector<1x32xf32> to vector<16x32xf32>
    %125 = arith.mulf %123, %124 : vector<16x32xf32>
    %126 = vector.broadcast %107 : vector<1x32xf32> to vector<16x32xf32>
    %127 = arith.addf %125, %126 : vector<16x32xf32>
    %c0_105 = arith.constant 0 : index
    %c0_106 = arith.constant 0 : index
    %128 = vector.load %arg4[%c0_105, %c0_106] : memref<8x8xf32, #tpu.memory_space<vmem>>, vector<8x8xf32>
    %c0_107 = arith.constant 0 : index
    %c0_108 = arith.constant 0 : index
    %129 = vector.load %arg11[%c0_107, %c0_108] : memref<32x32xf32, #tpu.memory_space<vmem>>, vector<32x32xf32>
    %cst_109 = arith.constant dense<0.000000e+00> : vector<16x32xf32>
    %130 = tpu.matmul %127, %129, %cst_109 {dimension_numbers = #tpu.dot_dimension_numbers<[1], [0], [0], [1], [0, 0, 1, 1], [], []>} : vector<16x32xf32>, vector<32x32xf32>, vector<16x32xf32> -> vector<16x32xf32>
    %c0_110 = arith.constant 0 : index
    %c0_111 = arith.constant 0 : index
    %131 = vector.load %arg12[%c0_110, %c0_111] : memref<1x32xf32, #tpu.memory_space<vmem>>, vector<1x32xf32>
    %132 = vector.broadcast %131 : vector<1x32xf32> to vector<16x32xf32>
    %133 = arith.addf %130, %132 : vector<16x32xf32>
    %c0_112 = arith.constant 0 : index
    %c0_113 = arith.constant 0 : index
    %134 = vector.load %arg24[%c0_112, %c0_113] : memref<16x96xf32, #tpu.memory_space<vmem>>, vector<16x32xf32>
    tpu.vector_store %arg24[%c0_112, %c0_113], %133 {strides = array<i32>} : memref<16x96xf32, #tpu.memory_space<vmem>>, vector<16x32xf32>,
    %c0_114 = arith.constant 0 : index
    %c0_115 = arith.constant 0 : index
    %135 = vector.load %arg13[%c0_114, %c0_115] : memref<32x64xf32, #tpu.memory_space<vmem>>, vector<32x64xf32>
    %cst_116 = arith.constant dense<0.000000e+00> : vector<16x64xf32>
    %136 = tpu.matmul %1, %135, %cst_116 {dimension_numbers = #tpu.dot_dimension_numbers<[1], [0], [0], [1], [0, 0, 1, 1], [], []>} : vector<16x32xf32>, vector<32x64xf32>, vector<16x64xf32> -> vector<16x64xf32>
    %c0_117 = arith.constant 0 : index
    %c0_118 = arith.constant 0 : index
    %137 = vector.load %arg14[%c0_117, %c0_118] : memref<1x64xf32, #tpu.memory_space<vmem>>, vector<1x64xf32>
    %138 = vector.broadcast %137 : vector<1x64xf32> to vector<16x64xf32>
    %139 = arith.addf %136, %138 : vector<16x64xf32>
    %c0_119 = arith.constant 0 : index
    %c32_120 = arith.constant 32 : index
    %140 = vector.load %arg24[%c0_119, %c32_120] : memref<16x96xf32, #tpu.memory_space<vmem>>, vector<16x64xf32>
    tpu.vector_store %arg24[%c0_119, %c32_120], %139 {strides = array<i32>} : memref<16x96xf32, #tpu.memory_space<vmem>>, vector<16x64xf32>,
    %c0_121 = arith.constant 0 : index
    %c0_122 = arith.constant 0 : index
    %141 = vector.load %arg24[%c0_121, %c0_122] : memref<16x96xf32, #tpu.memory_space<vmem>>, vector<8x8xf32>
    %c0_123 = arith.constant 0 : index
    %c32_124 = arith.constant 32 : index
    %142 = vector.load %arg24[%c0_123, %c32_124] : memref<16x96xf32, #tpu.memory_space<vmem>>, vector<8x8xf32>
    %143 = tpu.transpose %142, [1, 0] : vector<8x8xf32> -> vector<8x8xf32>
    %cst_125 = arith.constant dense<0.000000e+00> : vector<8x8xf32>
    %144 = tpu.matmul %141, %143, %cst_125 {dimension_numbers = #tpu.dot_dimension_numbers<[1], [0], [0], [1], [0, 0, 1, 1], [], []>} : vector<8x8xf32>, vector<8x8xf32>, vector<8x8xf32> -> vector<8x8xf32>
    %145 = arith.addf %144, %128 : vector<8x8xf32>
    %c8_126 = arith.constant 8 : index
    %c0_127 = arith.constant 0 : index
    %146 = vector.load %arg24[%c8_126, %c0_127] : memref<16x96xf32, #tpu.memory_space<vmem>>, vector<8x8xf32>
    %c8_128 = arith.constant 8 : index
    %c32_129 = arith.constant 32 : index
    %147 = vector.load %arg24[%c8_128, %c32_129] : memref<16x96xf32, #tpu.memory_space<vmem>>, vector<8x8xf32>
    %148 = tpu.transpose %147, [1, 0] : vector<8x8xf32> -> vector<8x8xf32>
    %cst_130 = arith.constant dense<0.000000e+00> : vector<8x8xf32>
    %149 = tpu.matmul %146, %148, %cst_130 {dimension_numbers = #tpu.dot_dimension_numbers<[1], [0], [0], [1], [0, 0, 1, 1], [], []>} : vector<8x8xf32>, vector<8x8xf32>, vector<8x8xf32> -> vector<8x8xf32>
    %150 = arith.addf %149, %128 : vector<8x8xf32>
    %c0_131 = arith.constant 0 : index
    %c8_132 = arith.constant 8 : index
    %151 = vector.load %arg24[%c0_131, %c8_132] : memref<16x96xf32, #tpu.memory_space<vmem>>, vector<8x8xf32>
    %c0_133 = arith.constant 0 : index
    %c40_134 = arith.constant 40 : index
    %152 = vector.load %arg24[%c0_133, %c40_134] : memref<16x96xf32, #tpu.memory_space<vmem>>, vector<8x8xf32>
    %153 = tpu.transpose %152, [1, 0] : vector<8x8xf32> -> vector<8x8xf32>
    %cst_135 = arith.constant dense<0.000000e+00> : vector<8x8xf32>
    %154 = tpu.matmul %151, %153, %cst_135 {dimension_numbers = #tpu.dot_dimension_numbers<[1], [0], [0], [1], [0, 0, 1, 1], [], []>} : vector<8x8xf32>, vector<8x8xf32>, vector<8x8xf32> -> vector<8x8xf32>
    %155 = arith.addf %154, %128 : vector<8x8xf32>
    %c8_136 = arith.constant 8 : index
    %c8_137 = arith.constant 8 : index
    %156 = vector.load %arg24[%c8_136, %c8_137] : memref<16x96xf32, #tpu.memory_space<vmem>>, vector<8x8xf32>
    %c8_138 = arith.constant 8 : index
    %c40_139 = arith.constant 40 : index
    %157 = vector.load %arg24[%c8_138, %c40_139] : memref<16x96xf32, #tpu.memory_space<vmem>>, vector<8x8xf32>
    %158 = tpu.transpose %157, [1, 0] : vector<8x8xf32> -> vector<8x8xf32>
    %cst_140 = arith.constant dense<0.000000e+00> : vector<8x8xf32>
    %159 = tpu.matmul %156, %158, %cst_140 {dimension_numbers = #tpu.dot_dimension_numbers<[1], [0], [0], [1], [0, 0, 1, 1], [], []>} : vector<8x8xf32>, vector<8x8xf32>, vector<8x8xf32> -> vector<8x8xf32>
    %160 = arith.addf %159, %128 : vector<8x8xf32>
    %c0_141 = arith.constant 0 : index
    %c16_142 = arith.constant 16 : index
    %161 = vector.load %arg24[%c0_141, %c16_142] : memref<16x96xf32, #tpu.memory_space<vmem>>, vector<8x8xf32>
    %c0_143 = arith.constant 0 : index
    %c48_144 = arith.constant 48 : index
    %162 = vector.load %arg24[%c0_143, %c48_144] : memref<16x96xf32, #tpu.memory_space<vmem>>, vector<8x8xf32>
    %163 = tpu.transpose %162, [1, 0] : vector<8x8xf32> -> vector<8x8xf32>
    %cst_145 = arith.constant dense<0.000000e+00> : vector<8x8xf32>
    %164 = tpu.matmul %161, %163, %cst_145 {dimension_numbers = #tpu.dot_dimension_numbers<[1], [0], [0], [1], [0, 0, 1, 1], [], []>} : vector<8x8xf32>, vector<8x8xf32>, vector<8x8xf32> -> vector<8x8xf32>
    %165 = arith.addf %164, %128 : vector<8x8xf32>
    %c8_146 = arith.constant 8 : index
    %c16_147 = arith.constant 16 : index
    %166 = vector.load %arg24[%c8_146, %c16_147] : memref<16x96xf32, #tpu.memory_space<vmem>>, vector<8x8xf32>
    %c8_148 = arith.constant 8 : index
    %c48_149 = arith.constant 48 : index
    %167 = vector.load %arg24[%c8_148, %c48_149] : memref<16x96xf32, #tpu.memory_space<vmem>>, vector<8x8xf32>
    %168 = tpu.transpose %167, [1, 0] : vector<8x8xf32> -> vector<8x8xf32>
    %cst_150 = arith.constant dense<0.000000e+00> : vector<8x8xf32>
    %169 = tpu.matmul %166, %168, %cst_150 {dimension_numbers = #tpu.dot_dimension_numbers<[1], [0], [0], [1], [0, 0, 1, 1], [], []>} : vector<8x8xf32>, vector<8x8xf32>, vector<8x8xf32> -> vector<8x8xf32>
    %170 = arith.addf %169, %128 : vector<8x8xf32>
    %c0_151 = arith.constant 0 : index
    %c24_152 = arith.constant 24 : index
    %171 = vector.load %arg24[%c0_151, %c24_152] : memref<16x96xf32, #tpu.memory_space<vmem>>, vector<8x8xf32>
    %c0_153 = arith.constant 0 : index
    %c56_154 = arith.constant 56 : index
    %172 = vector.load %arg24[%c0_153, %c56_154] : memref<16x96xf32, #tpu.memory_space<vmem>>, vector<8x8xf32>
    %173 = tpu.transpose %172, [1, 0] : vector<8x8xf32> -> vector<8x8xf32>
    %cst_155 = arith.constant dense<0.000000e+00> : vector<8x8xf32>
    %174 = tpu.matmul %171, %173, %cst_155 {dimension_numbers = #tpu.dot_dimension_numbers<[1], [0], [0], [1], [0, 0, 1, 1], [], []>} : vector<8x8xf32>, vector<8x8xf32>, vector<8x8xf32> -> vector<8x8xf32>
    %175 = arith.addf %174, %128 : vector<8x8xf32>
    %c8_156 = arith.constant 8 : index
    %c24_157 = arith.constant 24 : index
    %176 = vector.load %arg24[%c8_156, %c24_157] : memref<16x96xf32, #tpu.memory_space<vmem>>, vector<8x8xf32>
    %c8_158 = arith.constant 8 : index
    %c56_159 = arith.constant 56 : index
    %177 = vector.load %arg24[%c8_158, %c56_159] : memref<16x96xf32, #tpu.memory_space<vmem>>, vector<8x8xf32>
    %178 = tpu.transpose %177, [1, 0] : vector<8x8xf32> -> vector<8x8xf32>
    %cst_160 = arith.constant dense<0.000000e+00> : vector<8x8xf32>
    %179 = tpu.matmul %176, %178, %cst_160 {dimension_numbers = #tpu.dot_dimension_numbers<[1], [0], [0], [1], [0, 0, 1, 1], [], []>} : vector<8x8xf32>, vector<8x8xf32>, vector<8x8xf32> -> vector<8x8xf32>
    %180 = arith.addf %179, %128 : vector<8x8xf32>
    %181 = tpu.concatenate %145, %150, %155, %160, %165, %170, %175, %180 in 0 : vector<8x8xf32>, vector<8x8xf32>, vector<8x8xf32>, vector<8x8xf32>, vector<8x8xf32>, vector<8x8xf32>, vector<8x8xf32>, vector<8x8xf32> -> vector<64x8xf32>
    %cst_161 = arith.constant dense<0xFF800000> : vector<64xf32>
    %182 = vector.multi_reduction <maximumf>, %181, %cst_161 [1] : vector<64x8xf32> to vector<64xf32>
    %183 = vector.shape_cast %182 : vector<64xf32> to vector<64x1xf32>
    %184 = vector.broadcast %183 : vector<64x1xf32> to vector<64x8xf32>
    %185 = arith.subf %181, %184 : vector<64x8xf32>
    %186 = math.exp %185 : vector<64x8xf32>
    %cst_162 = arith.constant dense<0.000000e+00> : vector<64xf32>
    %187 = vector.multi_reduction <add>, %186, %cst_162 [1] : vector<64x8xf32> to vector<64xf32>
    %188 = vector.shape_cast %187 : vector<64xf32> to vector<64x1xf32>
    %189 = vector.broadcast %188 : vector<64x1xf32> to vector<64x8xf32>
    %190 = arith.divf %186, %189 : vector<64x8xf32>
    %191 = vector.extract_strided_slice %190 {offsets = [0, 0], sizes = [8, 8], strides = [1, 1]} : vector<64x8xf32> to vector<8x8xf32>
    %c0_163 = arith.constant 0 : index
    %c64_164 = arith.constant 64 : index
    %192 = vector.load %arg24[%c0_163, %c64_164] : memref<16x96xf32, #tpu.memory_space<vmem>>, vector<8x8xf32>
    %cst_165 = arith.constant dense<0.000000e+00> : vector<8x8xf32>
    %193 = tpu.matmul %191, %192, %cst_165 {dimension_numbers = #tpu.dot_dimension_numbers<[1], [0], [0], [1], [0, 0, 1, 1], [], []>} : vector<8x8xf32>, vector<8x8xf32>, vector<8x8xf32> -> vector<8x8xf32>
    %c0_166 = arith.constant 0 : index
    %c0_167 = arith.constant 0 : index
    %194 = vector.load %arg25[%c0_166, %c0_167] : memref<16x32xf32, #tpu.memory_space<vmem>>, vector<8x8xf32>
    tpu.vector_store %arg25[%c0_166, %c0_167], %193 {strides = array<i32>} : memref<16x32xf32, #tpu.memory_space<vmem>>, vector<8x8xf32>,
    %195 = vector.extract_strided_slice %190 {offsets = [8, 0], sizes = [8, 8], strides = [1, 1]} : vector<64x8xf32> to vector<8x8xf32>
    %c8_168 = arith.constant 8 : index
    %c64_169 = arith.constant 64 : index
    %196 = vector.load %arg24[%c8_168, %c64_169] : memref<16x96xf32, #tpu.memory_space<vmem>>, vector<8x8xf32>
    %cst_170 = arith.constant dense<0.000000e+00> : vector<8x8xf32>
    %197 = tpu.matmul %195, %196, %cst_170 {dimension_numbers = #tpu.dot_dimension_numbers<[1], [0], [0], [1], [0, 0, 1, 1], [], []>} : vector<8x8xf32>, vector<8x8xf32>, vector<8x8xf32> -> vector<8x8xf32>
    %c8_171 = arith.constant 8 : index
    %c0_172 = arith.constant 0 : index
    %198 = vector.load %arg25[%c8_171, %c0_172] : memref<16x32xf32, #tpu.memory_space<vmem>>, vector<8x8xf32>
    tpu.vector_store %arg25[%c8_171, %c0_172], %197 {strides = array<i32>} : memref<16x32xf32, #tpu.memory_space<vmem>>, vector<8x8xf32>,
    %199 = vector.extract_strided_slice %190 {offsets = [16, 0], sizes = [8, 8], strides = [1, 1]} : vector<64x8xf32> to vector<8x8xf32>
    %c0_173 = arith.constant 0 : index
    %c72_174 = arith.constant 72 : index
    %200 = vector.load %arg24[%c0_173, %c72_174] : memref<16x96xf32, #tpu.memory_space<vmem>>, vector<8x8xf32>
    %cst_175 = arith.constant dense<0.000000e+00> : vector<8x8xf32>
    %201 = tpu.matmul %199, %200, %cst_175 {dimension_numbers = #tpu.dot_dimension_numbers<[1], [0], [0], [1], [0, 0, 1, 1], [], []>} : vector<8x8xf32>, vector<8x8xf32>, vector<8x8xf32> -> vector<8x8xf32>
    %c0_176 = arith.constant 0 : index
    %c8_177 = arith.constant 8 : index
    %202 = vector.load %arg25[%c0_176, %c8_177] : memref<16x32xf32, #tpu.memory_space<vmem>>, vector<8x8xf32>
    tpu.vector_store %arg25[%c0_176, %c8_177], %201 {strides = array<i32>} : memref<16x32xf32, #tpu.memory_space<vmem>>, vector<8x8xf32>,
    %203 = vector.extract_strided_slice %190 {offsets = [24, 0], sizes = [8, 8], strides = [1, 1]} : vector<64x8xf32> to vector<8x8xf32>
    %c8_178 = arith.constant 8 : index
    %c72_179 = arith.constant 72 : index
    %204 = vector.load %arg24[%c8_178, %c72_179] : memref<16x96xf32, #tpu.memory_space<vmem>>, vector<8x8xf32>
    %cst_180 = arith.constant dense<0.000000e+00> : vector<8x8xf32>
    %205 = tpu.matmul %203, %204, %cst_180 {dimension_numbers = #tpu.dot_dimension_numbers<[1], [0], [0], [1], [0, 0, 1, 1], [], []>} : vector<8x8xf32>, vector<8x8xf32>, vector<8x8xf32> -> vector<8x8xf32>
    %c8_181 = arith.constant 8 : index
    %c8_182 = arith.constant 8 : index
    %206 = vector.load %arg25[%c8_181, %c8_182] : memref<16x32xf32, #tpu.memory_space<vmem>>, vector<8x8xf32>
    tpu.vector_store %arg25[%c8_181, %c8_182], %205 {strides = array<i32>} : memref<16x32xf32, #tpu.memory_space<vmem>>, vector<8x8xf32>,
    %207 = vector.extract_strided_slice %190 {offsets = [32, 0], sizes = [8, 8], strides = [1, 1]} : vector<64x8xf32> to vector<8x8xf32>
    %c0_183 = arith.constant 0 : index
    %c80_184 = arith.constant 80 : index
    %208 = vector.load %arg24[%c0_183, %c80_184] : memref<16x96xf32, #tpu.memory_space<vmem>>, vector<8x8xf32>
    %cst_185 = arith.constant dense<0.000000e+00> : vector<8x8xf32>
    %209 = tpu.matmul %207, %208, %cst_185 {dimension_numbers = #tpu.dot_dimension_numbers<[1], [0], [0], [1], [0, 0, 1, 1], [], []>} : vector<8x8xf32>, vector<8x8xf32>, vector<8x8xf32> -> vector<8x8xf32>
    %c0_186 = arith.constant 0 : index
    %c16_187 = arith.constant 16 : index
    %210 = vector.load %arg25[%c0_186, %c16_187] : memref<16x32xf32, #tpu.memory_space<vmem>>, vector<8x8xf32>
    tpu.vector_store %arg25[%c0_186, %c16_187], %209 {strides = array<i32>} : memref<16x32xf32, #tpu.memory_space<vmem>>, vector<8x8xf32>,
    %211 = vector.extract_strided_slice %190 {offsets = [40, 0], sizes = [8, 8], strides = [1, 1]} : vector<64x8xf32> to vector<8x8xf32>
    %c8_188 = arith.constant 8 : index
    %c80_189 = arith.constant 80 : index
    %212 = vector.load %arg24[%c8_188, %c80_189] : memref<16x96xf32, #tpu.memory_space<vmem>>, vector<8x8xf32>
    %cst_190 = arith.constant dense<0.000000e+00> : vector<8x8xf32>
    %213 = tpu.matmul %211, %212, %cst_190 {dimension_numbers = #tpu.dot_dimension_numbers<[1], [0], [0], [1], [0, 0, 1, 1], [], []>} : vector<8x8xf32>, vector<8x8xf32>, vector<8x8xf32> -> vector<8x8xf32>
    %c8_191 = arith.constant 8 : index
    %c16_192 = arith.constant 16 : index
    %214 = vector.load %arg25[%c8_191, %c16_192] : memref<16x32xf32, #tpu.memory_space<vmem>>, vector<8x8xf32>
    tpu.vector_store %arg25[%c8_191, %c16_192], %213 {strides = array<i32>} : memref<16x32xf32, #tpu.memory_space<vmem>>, vector<8x8xf32>,
    %215 = vector.extract_strided_slice %190 {offsets = [48, 0], sizes = [8, 8], strides = [1, 1]} : vector<64x8xf32> to vector<8x8xf32>
    %c0_193 = arith.constant 0 : index
    %c88_194 = arith.constant 88 : index
    %216 = vector.load %arg24[%c0_193, %c88_194] : memref<16x96xf32, #tpu.memory_space<vmem>>, vector<8x8xf32>
    %cst_195 = arith.constant dense<0.000000e+00> : vector<8x8xf32>
    %217 = tpu.matmul %215, %216, %cst_195 {dimension_numbers = #tpu.dot_dimension_numbers<[1], [0], [0], [1], [0, 0, 1, 1], [], []>} : vector<8x8xf32>, vector<8x8xf32>, vector<8x8xf32> -> vector<8x8xf32>
    %c0_196 = arith.constant 0 : index
    %c24_197 = arith.constant 24 : index
    %218 = vector.load %arg25[%c0_196, %c24_197] : memref<16x32xf32, #tpu.memory_space<vmem>>, vector<8x8xf32>
    tpu.vector_store %arg25[%c0_196, %c24_197], %217 {strides = array<i32>} : memref<16x32xf32, #tpu.memory_space<vmem>>, vector<8x8xf32>,
    %219 = vector.extract_strided_slice %190 {offsets = [56, 0], sizes = [8, 8], strides = [1, 1]} : vector<64x8xf32> to vector<8x8xf32>
    %c8_198 = arith.constant 8 : index
    %c88_199 = arith.constant 88 : index
    %220 = vector.load %arg24[%c8_198, %c88_199] : memref<16x96xf32, #tpu.memory_space<vmem>>, vector<8x8xf32>
    %cst_200 = arith.constant dense<0.000000e+00> : vector<8x8xf32>
    %221 = tpu.matmul %219, %220, %cst_200 {dimension_numbers = #tpu.dot_dimension_numbers<[1], [0], [0], [1], [0, 0, 1, 1], [], []>} : vector<8x8xf32>, vector<8x8xf32>, vector<8x8xf32> -> vector<8x8xf32>
    %c8_201 = arith.constant 8 : index
    %c24_202 = arith.constant 24 : index
    %222 = vector.load %arg25[%c8_201, %c24_202] : memref<16x32xf32, #tpu.memory_space<vmem>>, vector<8x8xf32>
    tpu.vector_store %arg25[%c8_201, %c24_202], %221 {strides = array<i32>} : memref<16x32xf32, #tpu.memory_space<vmem>>, vector<8x8xf32>,
    %c0_203 = arith.constant 0 : index
    %c0_204 = arith.constant 0 : index
    %223 = vector.load %arg25[%c0_203, %c0_204] : memref<16x32xf32, #tpu.memory_space<vmem>>, vector<16x32xf32>
    %c0_205 = arith.constant 0 : index
    %c0_206 = arith.constant 0 : index
    %224 = vector.load %arg15[%c0_205, %c0_206] : memref<32x32xf32, #tpu.memory_space<vmem>>, vector<32x32xf32>
    %cst_207 = arith.constant dense<0.000000e+00> : vector<16x32xf32>
    %225 = tpu.matmul %223, %224, %cst_207 {dimension_numbers = #tpu.dot_dimension_numbers<[1], [0], [0], [1], [0, 0, 1, 1], [], []>} : vector<16x32xf32>, vector<32x32xf32>, vector<16x32xf32> -> vector<16x32xf32>
    %c0_208 = arith.constant 0 : index
    %c0_209 = arith.constant 0 : index
    %226 = vector.load %arg16[%c0_208, %c0_209] : memref<1x32xf32, #tpu.memory_space<vmem>>, vector<1x32xf32>
    %227 = vector.broadcast %226 : vector<1x32xf32> to vector<16x32xf32>
    %228 = arith.addf %225, %227 : vector<16x32xf32>
    %229 = arith.addf %127, %228 : vector<16x32xf32>
    %230 = vector.extract_strided_slice %2 {offsets = [1, 0], sizes = [1, 32], strides = [1, 1]} : vector<3x32xf32> to vector<1x32xf32>
    %231 = vector.extract_strided_slice %3 {offsets = [1, 0], sizes = [1, 32], strides = [1, 1]} : vector<3x32xf32> to vector<1x32xf32>
    %cst_210 = arith.constant dense<0.000000e+00> : vector<16xf32>
    %232 = vector.multi_reduction <add>, %229, %cst_210 [1] : vector<16x32xf32> to vector<16xf32>
    %233 = vector.shape_cast %232 : vector<16xf32> to vector<16x1xf32>
    %cst_211 = arith.constant 3.200000e+01 : f32
    %234 = vector.broadcast %cst_211 : f32 to vector<16x1xf32>
    %235 = arith.divf %233, %234 : vector<16x1xf32>
    %236 = vector.broadcast %235 : vector<16x1xf32> to vector<16x32xf32>
    %237 = arith.subf %229, %236 : vector<16x32xf32>
    %238 = arith.mulf %237, %237 : vector<16x32xf32>
    %cst_212 = arith.constant dense<0.000000e+00> : vector<16xf32>
    %239 = vector.multi_reduction <add>, %238, %cst_212 [1] : vector<16x32xf32> to vector<16xf32>
    %240 = vector.shape_cast %239 : vector<16xf32> to vector<16x1xf32>
    %cst_213 = arith.constant 3.200000e+01 : f32
    %241 = vector.broadcast %cst_213 : f32 to vector<16x1xf32>
    %242 = arith.divf %240, %241 : vector<16x1xf32>
    %cst_214 = arith.constant 9.99999974E-6 : f32
    %243 = vector.broadcast %cst_214 : f32 to vector<16x1xf32>
    %244 = arith.addf %242, %243 : vector<16x1xf32>
    %245 = math.rsqrt %244 : vector<16x1xf32>
    %246 = vector.broadcast %245 : vector<16x1xf32> to vector<16x32xf32>
    %247 = arith.mulf %237, %246 : vector<16x32xf32>
    %248 = vector.broadcast %230 : vector<1x32xf32> to vector<16x32xf32>
    %249 = arith.mulf %247, %248 : vector<16x32xf32>
    %250 = vector.broadcast %231 : vector<1x32xf32> to vector<16x32xf32>
    %251 = arith.addf %249, %250 : vector<16x32xf32>
    %c0_215 = arith.constant 0 : index
    %c0_216 = arith.constant 0 : index
    %252 = vector.load %arg17[%c0_215, %c0_216] : memref<32x64xf32, #tpu.memory_space<vmem>>, vector<32x64xf32>
    %cst_217 = arith.constant dense<0.000000e+00> : vector<16x64xf32>
    %253 = tpu.matmul %251, %252, %cst_217 {dimension_numbers = #tpu.dot_dimension_numbers<[1], [0], [0], [1], [0, 0, 1, 1], [], []>} : vector<16x32xf32>, vector<32x64xf32>, vector<16x64xf32> -> vector<16x64xf32>
    %c0_218 = arith.constant 0 : index
    %c0_219 = arith.constant 0 : index
    %254 = vector.load %arg18[%c0_218, %c0_219] : memref<1x64xf32, #tpu.memory_space<vmem>>, vector<1x64xf32>
    %255 = vector.broadcast %254 : vector<1x64xf32> to vector<16x64xf32>
    %256 = arith.addf %253, %255 : vector<16x64xf32>
    %cst_220 = arith.constant 0.000000e+00 : f32
    %257 = vector.broadcast %cst_220 : f32 to vector<16x64xf32>
    %258 = arith.maximumf %256, %257 : vector<16x64xf32>
    %c0_221 = arith.constant 0 : index
    %c0_222 = arith.constant 0 : index
    %259 = vector.load %arg19[%c0_221, %c0_222] : memref<64x32xf32, #tpu.memory_space<vmem>>, vector<64x32xf32>
    %cst_223 = arith.constant dense<0.000000e+00> : vector<16x32xf32>
    %260 = tpu.matmul %258, %259, %cst_223 {dimension_numbers = #tpu.dot_dimension_numbers<[1], [0], [0], [1], [0, 0, 1, 1], [], []>} : vector<16x64xf32>, vector<64x32xf32>, vector<16x32xf32> -> vector<16x32xf32>
    %c0_224 = arith.constant 0 : index
    %c0_225 = arith.constant 0 : index
    %261 = vector.load %arg20[%c0_224, %c0_225] : memref<1x32xf32, #tpu.memory_space<vmem>>, vector<1x32xf32>
    %262 = vector.broadcast %261 : vector<1x32xf32> to vector<16x32xf32>
    %263 = arith.addf %260, %262 : vector<16x32xf32>
    %264 = arith.addf %251, %263 : vector<16x32xf32>
    %265 = vector.extract_strided_slice %2 {offsets = [2, 0], sizes = [1, 32], strides = [1, 1]} : vector<3x32xf32> to vector<1x32xf32>
    %266 = vector.extract_strided_slice %3 {offsets = [2, 0], sizes = [1, 32], strides = [1, 1]} : vector<3x32xf32> to vector<1x32xf32>
    %cst_226 = arith.constant dense<0.000000e+00> : vector<16xf32>
    %267 = vector.multi_reduction <add>, %264, %cst_226 [1] : vector<16x32xf32> to vector<16xf32>
    %268 = vector.shape_cast %267 : vector<16xf32> to vector<16x1xf32>
    %cst_227 = arith.constant 3.200000e+01 : f32
    %269 = vector.broadcast %cst_227 : f32 to vector<16x1xf32>
    %270 = arith.divf %268, %269 : vector<16x1xf32>
    %271 = vector.broadcast %270 : vector<16x1xf32> to vector<16x32xf32>
    %272 = arith.subf %264, %271 : vector<16x32xf32>
    %273 = arith.mulf %272, %272 : vector<16x32xf32>
    %cst_228 = arith.constant dense<0.000000e+00> : vector<16xf32>
    %274 = vector.multi_reduction <add>, %273, %cst_228 [1] : vector<16x32xf32> to vector<16xf32>
    %275 = vector.shape_cast %274 : vector<16xf32> to vector<16x1xf32>
    %cst_229 = arith.constant 3.200000e+01 : f32
    %276 = vector.broadcast %cst_229 : f32 to vector<16x1xf32>
    %277 = arith.divf %275, %276 : vector<16x1xf32>
    %cst_230 = arith.constant 9.99999974E-6 : f32
    %278 = vector.broadcast %cst_230 : f32 to vector<16x1xf32>
    %279 = arith.addf %277, %278 : vector<16x1xf32>
    %280 = math.rsqrt %279 : vector<16x1xf32>
    %281 = vector.broadcast %280 : vector<16x1xf32> to vector<16x32xf32>
    %282 = arith.mulf %272, %281 : vector<16x32xf32>
    %283 = vector.broadcast %265 : vector<1x32xf32> to vector<16x32xf32>
    %284 = arith.mulf %282, %283 : vector<16x32xf32>
    %285 = vector.broadcast %266 : vector<1x32xf32> to vector<16x32xf32>
    %286 = arith.addf %284, %285 : vector<16x32xf32>
    %c0_231 = arith.constant 0 : index
    %c0_232 = arith.constant 0 : index
    %287 = vector.load %arg23[%c0_231, %c0_232] : memref<16x32xf32, #tpu.memory_space<vmem>>, vector<16x32xf32>
    tpu.vector_store %arg23[%c0_231, %c0_232], %286 {strides = array<i32>} : memref<16x32xf32, #tpu.memory_space<vmem>>, vector<16x32xf32>,
    return
  }
  func.func @transform_0(%arg0: i32) -> (i32, i32) {
    %c0_i32 = arith.constant 0 : i32
    %c0_i32_0 = arith.constant 0 : i32
    return %arg0, %c0_i32 : i32, i32
  }
  func.func @transform_1(%arg0: i32) -> (i32, i32) {
    %c0_i32 = arith.constant 0 : i32
    %c0_i32_0 = arith.constant 0 : i32
    return %arg0, %c0_i32 : i32, i32
  }
  func.func @transform_2(%arg0: i32) -> (i32, i32) {
    %c0_i32 = arith.constant 0 : i32
    %c0_i32_0 = arith.constant 0 : i32
    %c0_i32_1 = arith.constant 0 : i32
    return %c0_i32, %c0_i32_0 : i32, i32
  }
  func.func @transform_3(%arg0: i32) -> (i32, i32) {
    %c0_i32 = arith.constant 0 : i32
    %c0_i32_0 = arith.constant 0 : i32
    %c0_i32_1 = arith.constant 0 : i32
    return %c0_i32, %c0_i32_0 : i32, i32
  }
  func.func @transform_4(%arg0: i32) -> (i32, i32) {
    %c0_i32 = arith.constant 0 : i32
    %c0_i32_0 = arith.constant 0 : i32
    %c0_i32_1 = arith.constant 0 : i32
    return %c0_i32, %c0_i32_0 : i32, i32
  }
  func.func @transform_5(%arg0: i32) -> (i32, i32) {
    %c0_i32 = arith.constant 0 : i32
    %c0_i32_0 = arith.constant 0 : i32
    %c0_i32_1 = arith.constant 0 : i32
    return %c0_i32, %c0_i32_0 : i32, i32
  }
  func.func @transform_6(%arg0: i32) -> (i32, i32) {
    %c0_i32 = arith.constant 0 : i32
    %c0_i32_0 = arith.constant 0 : i32
    %c0_i32_1 = arith.constant 0 : i32
    return %c0_i32, %c0_i32_0 : i32, i32
  }
  func.func @transform_7(%arg0: i32) -> (i32, i32) {
    %c0_i32 = arith.constant 0 : i32
    %c0_i32_0 = arith.constant 0 : i32
    %c0_i32_1 = arith.constant 0 : i32
    return %c0_i32, %c0_i32_0 : i32, i32
  }
  func.func @transform_8(%arg0: i32) -> (i32, i32) {
    %c0_i32 = arith.constant 0 : i32
    %c0_i32_0 = arith.constant 0 : i32
    %c0_i32_1 = arith.constant 0 : i32
    return %c0_i32, %c0_i32_0 : i32, i32
  }
  func.func @transform_9(%arg0: i32) -> (i32, i32) {
    %c0_i32 = arith.constant 0 : i32
    %c0_i32_0 = arith.constant 0 : i32
    %c0_i32_1 = arith.constant 0 : i32
    return %c0_i32, %c0_i32_0 : i32, i32
  }
  func.func @transform_10(%arg0: i32) -> (i32, i32) {
    %c0_i32 = arith.constant 0 : i32
    %c0_i32_0 = arith.constant 0 : i32
    %c0_i32_1 = arith.constant 0 : i32
    return %c0_i32, %c0_i32_0 : i32, i32
  }
  func.func @transform_11(%arg0: i32) -> (i32, i32) {
    %c0_i32 = arith.constant 0 : i32
    %c0_i32_0 = arith.constant 0 : i32
    %c0_i32_1 = arith.constant 0 : i32
    return %c0_i32, %c0_i32_0 : i32, i32
  }
  func.func @transform_12(%arg0: i32) -> (i32, i32) {
    %c0_i32 = arith.constant 0 : i32
    %c0_i32_0 = arith.constant 0 : i32
    %c0_i32_1 = arith.constant 0 : i32
    return %c0_i32, %c0_i32_0 : i32, i32
  }
  func.func @transform_13(%arg0: i32) -> (i32, i32) {
    %c0_i32 = arith.constant 0 : i32
    %c0_i32_0 = arith.constant 0 : i32
    %c0_i32_1 = arith.constant 0 : i32
    return %c0_i32, %c0_i32_0 : i32, i32
  }
  func.func @transform_14(%arg0: i32) -> (i32, i32) {
    %c0_i32 = arith.constant 0 : i32
    %c0_i32_0 = arith.constant 0 : i32
    %c0_i32_1 = arith.constant 0 : i32
    return %c0_i32, %c0_i32_0 : i32, i32
  }
  func.func @transform_15(%arg0: i32) -> (i32, i32) {
    %c0_i32 = arith.constant 0 : i32
    %c0_i32_0 = arith.constant 0 : i32
    %c0_i32_1 = arith.constant 0 : i32
    return %c0_i32, %c0_i32_0 : i32, i32
  }
  func.func @transform_16(%arg0: i32) -> (i32, i32) {
    %c0_i32 = arith.constant 0 : i32
    %c0_i32_0 = arith.constant 0 : i32
    %c0_i32_1 = arith.constant 0 : i32
    return %c0_i32, %c0_i32_0 : i32, i32
  }
  func.func @transform_17(%arg0: i32) -> (i32, i32) {
    %c0_i32 = arith.constant 0 : i32
    %c0_i32_0 = arith.constant 0 : i32
    %c0_i32_1 = arith.constant 0 : i32
    return %c0_i32, %c0_i32_0 : i32, i32
  }
  func.func @transform_18(%arg0: i32) -> (i32, i32) {
    %c0_i32 = arith.constant 0 : i32
    %c0_i32_0 = arith.constant 0 : i32
    %c0_i32_1 = arith.constant 0 : i32
    return %c0_i32, %c0_i32_0 : i32, i32
  }
  func.func @transform_19(%arg0: i32) -> (i32, i32) {
    %c0_i32 = arith.constant 0 : i32
    %c0_i32_0 = arith.constant 0 : i32
    %c0_i32_1 = arith.constant 0 : i32
    return %c0_i32, %c0_i32_0 : i32, i32
  }
  func.func @transform_20(%arg0: i32) -> (i32, i32) {
    %c0_i32 = arith.constant 0 : i32
    %c0_i32_0 = arith.constant 0 : i32
    %c0_i32_1 = arith.constant 0 : i32
    return %c0_i32, %c0_i32_0 : i32, i32
  }
  func.func @transform_21(%arg0: i32) -> (i32, i32) {
    %c0_i32 = arith.constant 0 : i32
    %c0_i32_0 = arith.constant 0 : i32
    %c0_i32_1 = arith.constant 0 : i32
    return %c0_i32, %c0_i32_0 : i32, i32
  }
  func.func @transform_22(%arg0: i32) -> (i32, i32) {
    %c0_i32 = arith.constant 0 : i32
    %c0_i32_0 = arith.constant 0 : i32
    return %arg0, %c0_i32 : i32, i32
  }
}

</mosaic_0001>

<bundles_post_ra>
// kernel: tpu_custom_call.1
= control target key start
LH: loop header
LB: loop body
LE: loop exit
PB: predicated region body
PF: predicated region fallthrough
CT: control target
= control target key end

     0   :  { %s5698_s0 = inlined_call_operand.hbm [shape: f32[16,32], index: 0, kind: input, shape index: {}]   ;;  %s5699_s1 = inlined_call_operand.hbm [shape: f32[16,32], index: 1, kind: input, shape index: {}]   ;;  %s5700_s2 = inlined_call_operand.hbm [shape: f32[8,8], index: 2, kind: input, shape index: {}]   ;;  %s5701_s3 = inlined_call_operand.hbm [shape: f32[8,8], index: 3, kind: input, shape index: {}]   ;;  %s5702_s4 = inlined_call_operand.vmem [shape: f32[32,32], index: 4, kind: input, shape index: {}]   ;;  %s5703_s5 = inlined_call_operand.hbm [shape: f32[1,32], index: 5, kind: input, shape index: {}]   ;;  %s5704_s6 = inlined_call_operand.vmem [shape: f32[32,64], index: 6, kind: input, shape index: {}]   ;;  %s5705_s7 = inlined_call_operand.hbm [shape: f32[1,64], index: 7, kind: input, shape index: {}]   ;;  %s5706_s8 = inlined_call_operand.vmem [shape: f32[32,32], index: 8, kind: input, shape index: {}]   ;;  %s5707_s9 = inlined_call_operand.hbm [shape: f32[1,32], index: 9, kind: input, shape index: {}]   ;;  %s5708_s10 = inlined_call_operand.vmem [shape: f32[32,32], index: 10, kind: input, shape index: {}]   ;;  %s5709_s11 = inlined_call_operand.hbm [shape: f32[1,32], index: 11, kind: input, shape index: {}]   ;;  %s5710_s12 = inlined_call_operand.hbm [shape: f32[32,64], index: 12, kind: input, shape index: {}]   ;;  %s5711_s13 = inlined_call_operand.hbm [shape: f32[1,64], index: 13, kind: input, shape index: {}]   ;;  %s5712_s14 = inlined_call_operand.hbm [shape: f32[32,32], index: 14, kind: input, shape index: {}]   ;;  %s5713_s15 = inlined_call_operand.hbm [shape: f32[1,32], index: 15, kind: input, shape index: {}]   ;;  %s5714_s16 = inlined_call_operand.hbm [shape: f32[32,64], index: 16, kind: input, shape index: {}]   ;;  %s5715_s17 = inlined_call_operand.hbm [shape: f32[1,64], index: 17, kind: input, shape index: {}]   ;;  %s5716_s18 = inlined_call_operand.vmem [shape: f32[64,32], index: 18, kind: input, shape index: {}]   ;;  %s5717_s19 = inlined_call_operand.vmem [shape: f32[1,32], index: 19, kind: input, shape index: {}]   ;;  %s5718_s20 = inlined_call_operand.vmem [shape: f32[3,32], index: 20, kind: input, shape index: {}]   ;;  %s5719_s21 = inlined_call_operand.vmem [shape: f32[3,32], index: 21, kind: input, shape index: {}]   ;;  %s5720_s22 = inlined_call_operand.hbm [shape: f32[16,32], index: 22, kind: output, shape index: {}]  }
   0x1   :  { %5731 = sst [smem:[#allocation37_spill]] %s5698_s0 }
   0x2   :  { %5732 = sst [smem:[#allocation38_spill]] %s5699_s1 }
   0x3   :  { %5733 = sst [smem:[#allocation39_spill]] %s5700_s2 }
   0x4   :  { %5734 = sst [smem:[#allocation40_spill]] %s5701_s3 }
   0x5   :  { %5735 = sst [smem:[#allocation41_spill]] %s5702_s4 }
   0x6   :  { %5736 = sst [smem:[#allocation42_spill]] %s5703_s5 }
   0x7   :  { %5737 = sst [smem:[#allocation43_spill]] %s5704_s6 }
   0x8   :  { %5738 = sst [smem:[#allocation44_spill]] %s5720_s22 }
   0x9   :  { %27 = vsyncpa [#allocation5], 0 }
   0xa   :  { %28 = vsyncpa [#allocation8], 0 }
   0xb   :  { %29 = vsyncpa [#allocation11], 0 }
   0xc   :  { %30 = vsyncpa [#allocation14], 0 }
   0xd   :  { %31 = vsyncpa [#allocation17], 0 }
   0xe   :  { %32 = vsyncpa [#allocation20], 0 }
   0xf   :  { %33 = vsyncpa [#allocation23], 0 }
  0x10   :  { %34 = vsyncpa [#allocation26], 0 }
  0x11   :  { %35 = vsyncpa [#allocation6], 0  ;;  %s4875_s3 = smov [#allocation7]   ;;  %s4876_s29 = smov [#allocation10]  }
  0x12   :  { %s53_s28 = sshll.u32 %s4875_s3, 4  ;;  %s76_s30 = sshll.u32 %s4876_s29, 4  ;;  %s54_s28 = int_to_ptr.vmem [resolvable:$true] %s53_s28  ;;  %s77_s30 = int_to_ptr.vmem [resolvable:$true] %s76_s30 }
  0x13   :  { %s5739_s23 = sld [smem:[#allocation38_spill]] }
  0x19   :  { %s4527_s1 = scalar_lea.hbm %s5739_s23, 256 }
  0x1a   :  { %p4528_p0 = scmp.ne.s32.totalorder %s5739_s23, %s4527_s1  ;;  %p4531_p1 = scmp.lt.u32.totalorder %s4527_s1, %s5739_s23 }
  0x1c   :  { %p4533_p2 = pnand %p4531_p1, %p4528_p0 }
  0x1e   :  { %4536 = shalt.err (!%p4533_p2)
}
  0x1f   :  { %s4537_s26 = scalar_lea.vmem %s54_s28, 256  ;;  %p4542_p4 = scmp.lt.s32.totalorder %s54_s28, %s54_s28 }
  0x20   :  { %p4538_p3 = scmp.ne.s32.totalorder %s54_s28, %s4537_s26  ;;  %p4543_p5 = scmp.lt.s32.totalorder %s4537_s26, %s4537_s26 }
  0x22   :  { %p4544_p6 = por %p4543_p5, %p4542_p4 }
  0x24   :  { %p4545_p7 = pnand %p4544_p6, %p4538_p3 }
  0x26   :  { %4548 = shalt.err (!%p4545_p7)
}
  0x27   :  { %s5729_s2 = smov 128   ;;  %s4878_s27 = smov 8  }
  0x28   :  { %59 = dma.hbm_to_vmem [thread:$0]  %s5739_s23, 256, %s54_s28, [#allocation8], %s5729_s2, %s5729_s2, %s4878_s27  }
  0x29   :  { %s5740_s1 = sld [smem:[#allocation40_spill]] }
  0x2f   :  { %s4549_s5 = scalar_lea.hbm %s5740_s1, 128 }
  0x30   :  { %p4550_p8 = scmp.ne.s32.totalorder %s5740_s1, %s4549_s5  ;;  %p4553_p9 = scmp.lt.u32.totalorder %s4549_s5, %s5740_s1 }
  0x32   :  { %p4555_p10 = pnand %p4553_p9, %p4550_p8 }
  0x34   :  { %4558 = shalt.err (!%p4555_p10)
}
  0x35   :  { %s4559_s22 = scalar_lea.vmem %s77_s30, 128  ;;  %p4564_p12 = scmp.lt.s32.totalorder %s77_s30, %s77_s30 }
  0x36   :  { %p4560_p11 = scmp.ne.s32.totalorder %s77_s30, %s4559_s22  ;;  %p4565_p13 = scmp.lt.s32.totalorder %s4559_s22, %s4559_s22 }
  0x38   :  { %p4566_p0 = por %p4565_p13, %p4564_p12 }
  0x3a   :  { %p4567_p1 = pnand %p4566_p0, %p4560_p11 }
  0x3c   :  { %4570 = shalt.err (!%p4567_p1)
}
  0x3d   :  { %79 = dma.hbm_to_vmem [thread:$0]  %s5740_s1, 128, %s77_s30, [#allocation11]  }
  0x3e   :  { %s4879_s3 = smov [#allocation13]   ;;  %s4880_s4 = smov [#allocation16]  }
  0x3f   :  { %s100_s29 = sshll.u32 %s4879_s3, 4  ;;  %s124_s0 = sshll.u32 %s4880_s4, 4  ;;  %s101_s29 = int_to_ptr.vmem [resolvable:$true] %s100_s29  ;;  %s125_s0 = int_to_ptr.vmem [resolvable:$true] %s124_s0 }
  0x40   :  { %s4571_s6 = scalar_lea.hbm %s5705_s7, 16 }
  0x41   :  { %p4572_p2 = scmp.ne.s32.totalorder %s5705_s7, %s4571_s6  ;;  %p4575_p3 = scmp.lt.u32.totalorder %s4571_s6, %s5705_s7 }
  0x43   :  { %p4577_p4 = pnand %p4575_p3, %p4572_p2 }
  0x45   :  { %4580 = shalt.err (!%p4577_p4)
}
  0x46   :  { %s4581_s30 = scalar_lea.vmem %s101_s29, 16  ;;  %s4585_s1 = scalar_lea.vmem %s101_s29, 32 }
  0x47   :  { %p4582_p5 = scmp.ne.s32.totalorder %s101_s29, %s4581_s30  ;;  %p4586_p6 = scmp.lt.s32.totalorder %s101_s29, %s101_s29 }
  0x48   :  { %p4587_p7 = scmp.lt.s32.totalorder %s4585_s1, %s4581_s30 }
  0x4a   :  { %p4588_p8 = por %p4587_p7, %p4586_p6 }
  0x4c   :  { %p4589_p9 = pnand %p4588_p8, %p4582_p5 }
  0x4e   :  { %4592 = shalt.err (!%p4589_p9)
}
  0x4f   :  { %103 = dma.hbm_to_vmem [thread:$0]  %s5705_s7, 16, %s101_s29, [#allocation14]  }
  0x50   :  { %s4593_s5 = scalar_lea.hbm %s5709_s11, 16 }
  0x51   :  { %p4594_p10 = scmp.ne.s32.totalorder %s5709_s11, %s4593_s5  ;;  %p4597_p11 = scmp.lt.u32.totalorder %s4593_s5, %s5709_s11 }
  0x53   :  { %p4599_p12 = pnand %p4597_p11, %p4594_p10 }
  0x55   :  { %4602 = shalt.err (!%p4599_p12)
}
  0x56   :  { %s4603_s26 = scalar_lea.vmem %s125_s0, 16  ;;  %s4607_s22 = scalar_lea.vmem %s125_s0, 32 }
  0x57   :  { %p4604_p13 = scmp.ne.s32.totalorder %s125_s0, %s4603_s26  ;;  %p4608_p0 = scmp.lt.s32.totalorder %s125_s0, %s125_s0 }
  0x58   :  { %p4609_p1 = scmp.lt.s32.totalorder %s4607_s22, %s4603_s26 }
  0x5a   :  { %p4610_p2 = por %p4609_p1, %p4608_p0 }
  0x5c   :  { %p4611_p3 = pnand %p4610_p2, %p4604_p13 }
  0x5e   :  { %4614 = shalt.err (!%p4611_p3)
}
  0x5f   :  { %127 = dma.hbm_to_vmem [thread:$0]  %s5709_s11, 16, %s125_s0, [#allocation17]  }
  0x60   :  { %s4881_s30 = smov [#allocation19]   ;;  %s4882_s28 = smov [#allocation22]  }
  0x61   :  { %s146_s1 = sshll.u32 %s4881_s30, 4  ;;  %s168_s23 = sshll.u32 %s4882_s28, 4  ;;  %s147_s1 = int_to_ptr.vmem [resolvable:$true] %s146_s1  ;;  %s169_s23 = int_to_ptr.vmem [resolvable:$true] %s168_s23 }
  0x62   :  { %s4615_s5 = scalar_lea.hbm %s5711_s13, 16 }
  0x63   :  { %p4616_p4 = scmp.ne.s32.totalorder %s5711_s13, %s4615_s5  ;;  %p4619_p5 = scmp.lt.u32.totalorder %s4615_s5, %s5711_s13 }
  0x65   :  { %p4621_p6 = pnand %p4619_p5, %p4616_p4 }
  0x67   :  { %4624 = shalt.err (!%p4621_p6)
}
  0x68   :  { %s4625_s11 = scalar_lea.vmem %s147_s1, 16  ;;  %s4629_s0 = scalar_lea.vmem %s147_s1, 32 }
  0x69   :  { %p4626_p7 = scmp.ne.s32.totalorder %s147_s1, %s4625_s11  ;;  %p4630_p8 = scmp.lt.s32.totalorder %s147_s1, %s147_s1 }
  0x6a   :  { %p4631_p9 = scmp.lt.s32.totalorder %s4629_s0, %s4625_s11 }
  0x6c   :  { %p4632_p10 = por %p4631_p9, %p4630_p8 }
  0x6e   :  { %p4633_p11 = pnand %p4632_p10, %p4626_p7 }
  0x70   :  { %4636 = shalt.err (!%p4633_p11)
}
  0x71   :  { %149 = dma.hbm_to_vmem [thread:$0]  %s5711_s13, 16, %s147_s1, [#allocation20]  }
  0x72   :  { %s4637_s30 = scalar_lea.hbm %s5713_s15, 16 }
  0x73   :  { %p4638_p12 = scmp.ne.s32.totalorder %s5713_s15, %s4637_s30  ;;  %p4641_p13 = scmp.lt.u32.totalorder %s4637_s30, %s5713_s15 }
  0x75   :  { %p4643_p0 = pnand %p4641_p13, %p4638_p12 }
  0x77   :  { %4646 = shalt.err (!%p4643_p0)
}
  0x78   :  { %s4647_s2 = scalar_lea.vmem %s169_s23, 16  ;;  %s4651_s24 = scalar_lea.vmem %s169_s23, 32 }
  0x79   :  { %p4648_p1 = scmp.ne.s32.totalorder %s169_s23, %s4647_s2  ;;  %p4652_p2 = scmp.lt.s32.totalorder %s169_s23, %s169_s23 }
  0x7a   :  { %p4653_p3 = scmp.lt.s32.totalorder %s4651_s24, %s4647_s2 }
  0x7c   :  { %p4654_p4 = por %p4653_p3, %p4652_p2 }
  0x7e   :  { %p4655_p5 = pnand %p4654_p4, %p4648_p1 }
  0x80   :  { %4658 = shalt.err (!%p4655_p5)
}
  0x81   :  { %171 = dma.hbm_to_vmem [thread:$0]  %s5713_s15, 16, %s169_s23, [#allocation23]  }
  0x82   :  { %s4883_s6 = smov [#allocation4]   ;;  %s4884_s11 = smov [#allocation9]  }
  0x83   :  { %s41_s25 = sshll.u32 %s4883_s6, 4  ;;  %s66_s0 = sshll.u32 %s4884_s11, 4  ;;  %s42_s25 = int_to_ptr.vmem [resolvable:$true] %s41_s25  ;;  %s67_s0 = int_to_ptr.vmem [resolvable:$true] %s66_s0 }
  0x84   :  { %s5741_s7 = sld [smem:[#allocation37_spill]] }
  0x8a   :  { %s4659_s29 = scalar_lea.hbm %s5741_s7, 256 }
  0x8b   :  { %p4660_p6 = scmp.ne.s32.totalorder %s5741_s7, %s4659_s29  ;;  %p4663_p7 = scmp.lt.u32.totalorder %s4659_s29, %s5741_s7 }
  0x8d   :  { %p4665_p8 = pnand %p4663_p7, %p4660_p6 }
  0x8f   :  { %4668 = shalt.err (!%p4665_p8)
}
  0x90   :  { %s4669_s15 = scalar_lea.vmem %s42_s25, 256  ;;  %p4674_p10 = scmp.lt.s32.totalorder %s42_s25, %s42_s25 }
  0x91   :  { %p4670_p9 = scmp.ne.s32.totalorder %s42_s25, %s4669_s15  ;;  %p4675_p11 = scmp.lt.s32.totalorder %s4669_s15, %s4669_s15 }
  0x93   :  { %p4676_p12 = por %p4675_p11, %p4674_p10 }
  0x95   :  { %p4677_p13 = pnand %p4676_p12, %p4670_p9 }
  0x97   :  { %4680 = shalt.err (!%p4677_p13)
}
  0x98   :  { %s5742_s23 = smov 128   ;;  %s5743_s1 = sld [smem:[#allocation39_spill]] }
  0x99   :  { %47 = dma.hbm_to_vmem [thread:$0]  %s5741_s7, 256, %s42_s25, [#allocation5], %s5742_s23, %s5742_s23, %s4878_s27  }
  0x9e   :  { %s4681_s6 = scalar_lea.hbm %s5743_s1, 128 }
  0x9f   :  { %p4682_p0 = scmp.ne.s32.totalorder %s5743_s1, %s4681_s6  ;;  %p4685_p1 = scmp.lt.u32.totalorder %s4681_s6, %s5743_s1 }
  0xa1   :  { %p4687_p2 = pnand %p4685_p1, %p4682_p0 }
  0xa3   :  { %4690 = shalt.err (!%p4687_p2)
}
  0xa4   :  { %s4691_s30 = scalar_lea.vmem %s67_s0, 128  ;;  %p4696_p4 = scmp.lt.s32.totalorder %s67_s0, %s67_s0 }
  0xa5   :  { %p4692_p3 = scmp.ne.s32.totalorder %s67_s0, %s4691_s30  ;;  %p4697_p5 = scmp.lt.s32.totalorder %s4691_s30, %s4691_s30 }
  0xa7   :  { %p4698_p6 = por %p4697_p5, %p4696_p4 }
  0xa9   :  { %p4699_p7 = pnand %p4698_p6, %p4692_p3 }
  0xab   :  { %4702 = shalt.err (!%p4699_p7)
}
  0xac   :  { %69 = dma.hbm_to_vmem [thread:$0]  %s5743_s1, 128, %s67_s0, [#allocation8]  }
  0xad   :  { %s4885_s28 = smov [#allocation12]   ;;  %s4886_s4 = smov [#allocation15]  }
  0xae   :  { %s88_s3 = sshll.u32 %s4885_s28, 4  ;;  %s112_s15 = sshll.u32 %s4886_s4, 4  ;;  %s89_s3 = int_to_ptr.vmem [resolvable:$true] %s88_s3  ;;  %s113_s15 = int_to_ptr.vmem [resolvable:$true] %s112_s15 }
  0xaf   :  { %s5744_s24 = sld [smem:[#allocation42_spill]] }
  0xb5   :  { %s4703_s13 = scalar_lea.hbm %s5744_s24, 16 }
  0xb6   :  { %p4704_p8 = scmp.ne.s32.totalorder %s5744_s24, %s4703_s13  ;;  %p4707_p9 = scmp.lt.u32.totalorder %s4703_s13, %s5744_s24 }
  0xb8   :  { %p4709_p10 = pnand %p4707_p9, %p4704_p8 }
  0xba   :  { %4712 = shalt.err (!%p4709_p10)
}
  0xbb   :  { %s4713_s0 = scalar_lea.vmem %s89_s3, 16  ;;  %s4717_s1 = scalar_lea.vmem %s89_s3, 32 }
  0xbc   :  { %p4714_p11 = scmp.ne.s32.totalorder %s89_s3, %s4713_s0  ;;  %p4718_p12 = scmp.lt.s32.totalorder %s89_s3, %s89_s3 }
  0xbd   :  { %p4719_p13 = scmp.lt.s32.totalorder %s4717_s1, %s4713_s0 }
  0xbf   :  { %p4720_p0 = por %p4719_p13, %p4718_p12 }
  0xc1   :  { %p4721_p1 = pnand %p4720_p0, %p4714_p11 }
  0xc3   :  { %4724 = shalt.err (!%p4721_p1)
}
  0xc4   :  { %91 = dma.hbm_to_vmem [thread:$0]  %s5744_s24, 16, %s89_s3, [#allocation11]  }
  0xc5   :  { %s4725_s28 = scalar_lea.hbm %s5707_s9, 16 }
  0xc6   :  { %p4726_p2 = scmp.ne.s32.totalorder %s5707_s9, %s4725_s28  ;;  %p4729_p3 = scmp.lt.u32.totalorder %s4725_s28, %s5707_s9 }
  0xc8   :  { %p4731_p4 = pnand %p4729_p3, %p4726_p2 }
  0xca   :  { %4734 = shalt.err (!%p4731_p4)
}
  0xcb   :  { %s4735_s6 = scalar_lea.vmem %s113_s15, 16  ;;  %s4739_s11 = scalar_lea.vmem %s113_s15, 32 }
  0xcc   :  { %p4736_p5 = scmp.ne.s32.totalorder %s113_s15, %s4735_s6  ;;  %p4740_p6 = scmp.lt.s32.totalorder %s113_s15, %s113_s15 }
  0xcd   :  { %p4741_p7 = scmp.lt.s32.totalorder %s4739_s11, %s4735_s6 }
  0xcf   :  { %p4742_p8 = por %p4741_p7, %p4740_p6 }
  0xd1   :  { %p4743_p9 = pnand %p4742_p8, %p4736_p5 }
  0xd3   :  { %4746 = shalt.err (!%p4743_p9)
}
  0xd4   :  { %115 = dma.hbm_to_vmem [thread:$0]  %s5707_s9, 16, %s113_s15, [#allocation14]  }
  0xd5   :  { %s4887_s26 = smov [#allocation18]   ;;  %s4888_s0 = smov [#allocation21]  }
  0xd6   :  { %s133_s22 = sshll.u32 %s4887_s26, 4  ;;  %s155_s1 = sshll.u32 %s4888_s0, 4  ;;  %s134_s22 = int_to_ptr.vmem [resolvable:$true] %s133_s22  ;;  %s5149_s1 = int_to_ptr.vmem [resolvable:$true] %s155_s1 }
  0xd7   :  { %s4747_s25 = scalar_lea.hbm %s5710_s12, 512 }
  0xd8   :  { %p4748_p10 = scmp.ne.s32.totalorder %s5710_s12, %s4747_s25  ;;  %p4751_p11 = scmp.lt.u32.totalorder %s4747_s25, %s5710_s12 }
  0xda   :  { %p4753_p12 = pnand %p4751_p11, %p4748_p10 }
  0xdc   :  { %4756 = shalt.err (!%p4753_p12)
}
  0xdd   :  { %s4757_s9 = scalar_lea.vmem %s134_s22, 512  ;;  %p4762_p0 = scmp.lt.s32.totalorder %s134_s22, %s134_s22 }
  0xde   :  { %p4758_p13 = scmp.ne.s32.totalorder %s134_s22, %s4757_s9  ;;  %p4763_p1 = scmp.lt.s32.totalorder %s4757_s9, %s4757_s9 }
  0xe0   :  { %p4764_p2 = por %p4763_p1, %p4762_p0 }
  0xe2   :  { %p4765_p3 = pnand %p4764_p2, %p4758_p13 }
  0xe4   :  { %4768 = shalt.err (!%p4765_p3)
}
  0xe5   :  { %139 = dma.hbm_to_vmem [thread:$0]  %s5710_s12, 512, %s134_s22, [#allocation17], %s5742_s23, %s5742_s23, %s4878_s27  }
  0xe6   :  { %s4769_s11 = scalar_lea.hbm %s5712_s14, 512 }
  0xe7   :  { %p4770_p4 = scmp.ne.s32.totalorder %s5712_s14, %s4769_s11  ;;  %p4773_p5 = scmp.lt.u32.totalorder %s4769_s11, %s5712_s14 }
  0xe9   :  { %p4775_p6 = pnand %p4773_p5, %p4770_p4 }
  0xeb   :  { %4778 = shalt.err (!%p4775_p6)
}
  0xec   :  { %s4779_s29 = scalar_lea.vmem %s5149_s1, 512  ;;  %p4784_p8 = scmp.lt.s32.totalorder %s5149_s1, %s5149_s1 }
  0xed   :  { %p4780_p7 = scmp.ne.s32.totalorder %s5149_s1, %s4779_s29  ;;  %p4785_p9 = scmp.lt.s32.totalorder %s4779_s29, %s4779_s29 }
  0xef   :  { %p4786_p10 = por %p4785_p9, %p4784_p8 }
  0xf1   :  { %p4787_p11 = pnand %p4786_p10, %p4780_p7 }
  0xf3   :  { %4790 = shalt.err (!%p4787_p11)
}
  0xf4   :  { %161 = dma.hbm_to_vmem [thread:$0]  %s5712_s14, 512, %s5149_s1, [#allocation20], %s5742_s23, %s5742_s23, %s4878_s27  }
  0xf5   :  { %s4889_s30 = smov [#allocation24]   ;;  %s4890_s7 = smov [#allocation25]  }
  0xf6   :  { %s177_s25 = sshll.u32 %s4889_s30, 4  ;;  %s190_s28 = sshll.u32 %s4890_s7, 4  ;;  %s178_s25 = int_to_ptr.vmem [resolvable:$true] %s177_s25  ;;  %s191_s28 = int_to_ptr.vmem [resolvable:$true] %s190_s28 }
  0xf7   :  { %s4791_s9 = scalar_lea.hbm %s5714_s16, 512 }
  0xf8   :  { %p4792_p12 = scmp.ne.s32.totalorder %s5714_s16, %s4791_s9  ;;  %p4795_p13 = scmp.lt.u32.totalorder %s4791_s9, %s5714_s16 }
  0xfa   :  { %p4797_p0 = pnand %p4795_p13, %p4792_p12 }
  0xfc   :  { %4800 = shalt.err (!%p4797_p0)
}
  0xfd   :  { %s4801_s14 = scalar_lea.vmem %s178_s25, 512  ;;  %p4806_p2 = scmp.lt.s32.totalorder %s178_s25, %s178_s25 }
  0xfe   :  { %p4802_p1 = scmp.ne.s32.totalorder %s178_s25, %s4801_s14  ;;  %p4807_p3 = scmp.lt.s32.totalorder %s4801_s14, %s4801_s14 }
 0x100   :  { %p4808_p4 = por %p4807_p3, %p4806_p2 }
 0x102   :  { %p4809_p5 = pnand %p4808_p4, %p4802_p1 }
 0x104   :  { %4812 = shalt.err (!%p4809_p5)
}
 0x105   :  { %183 = dma.hbm_to_vmem [thread:$0]  %s5714_s16, 512, %s178_s25, [#allocation23], %s5742_s23, %s5742_s23, %s4878_s27  }
 0x106   :  { %s4813_s26 = scalar_lea.hbm %s5715_s17, 16 }
 0x107   :  { %p4814_p6 = scmp.ne.s32.totalorder %s5715_s17, %s4813_s26  ;;  %p4817_p7 = scmp.lt.u32.totalorder %s4813_s26, %s5715_s17 }
 0x109   :  { %p4819_p8 = pnand %p4817_p7, %p4814_p6 }
 0x10b   :  { %4822 = shalt.err (!%p4819_p8)
}
 0x10c   :  { %s4823_s30 = scalar_lea.vmem %s191_s28, 16  ;;  %s4827_s7 = scalar_lea.vmem %s191_s28, 32 }
 0x10d   :  { %p4824_p9 = scmp.ne.s32.totalorder %s191_s28, %s4823_s30  ;;  %p4828_p10 = scmp.lt.s32.totalorder %s191_s28, %s191_s28 }
 0x10e   :  { %p4829_p11 = scmp.lt.s32.totalorder %s4827_s7, %s4823_s30 }
 0x110   :  { %p4830_p12 = por %p4829_p11, %p4828_p10 }
 0x112   :  { %p4831_p13 = pnand %p4830_p12, %p4824_p9 }
 0x114   :  { %4834 = shalt.err (!%p4831_p13)
}
 0x115   :  { %193 = dma.hbm_to_vmem [thread:$0]  %s5715_s17, 16, %s191_s28, [#allocation26]  }
 0x116   :  { %4857 = dma.done.wait [#allocation5], 256  }
 0x117   :  { %4858 = vsyncadd [#allocation5], 4294967040 }
 0x118   :  { %4859 = dma.done.wait [#allocation8], 384  }
 0x119   :  { %4860 = vsyncadd [#allocation8], 4294966912 }
 0x11a   :  { %4861 = dma.done.wait [#allocation11], 144  }
 0x11b   :  { %4862 = vsyncadd [#allocation11], 4294967152 }
 0x11c   :  { %4863 = dma.done.wait [#allocation14], 32  }
 0x11d   :  { %4864 = vsyncadd [#allocation14], 4294967264 }
 0x11e   :  { %4865 = dma.done.wait [#allocation17], 528  }
 0x11f   :  { %4866 = vsyncadd [#allocation17], 4294966768 }
 0x120   :  { %4867 = dma.done.wait [#allocation20], 528  }
 0x121   :  { %4868 = vsyncadd [#allocation20], 4294966768 }
 0x122   :  { %4869 = dma.done.wait [#allocation23], 528  }
 0x123   :  { %4870 = vsyncadd [#allocation23], 4294966768 }
 0x124   :  { %4871 = dma.done.wait [#allocation26], 16  }
 0x125   :  { %4872 = vsyncadd [#allocation26], 4294967280  ;;  %vm262_vm0 = vcmask 261120   ;;  %s5745_s17 = sld [smem:[#allocation41_spill]]  ;;  %v5225_v5 = vld [vmem:[#allocation4] sm:$0xff]  ;;  %s5746_s11 = sld [smem:[#allocation43_spill]] }
 0x126   :  { %4098 = vmatprep.mubr.msk.f32.mxu1 %vm262_vm0, %v5225_v5  ;;  %v5241_v12 = vld [vmem:[#allocation4 + $0x8] sm:$0xff]  ;;  %v3902_v14 = vld [vmem:[#allocation12] ss:$0 sm:$0xff]  ;;  %v3905_v19 = vld [vmem:[#allocation13] ss:$0 sm:$0xff]  ;;  %s4891_s22 = smov 32  }
 0x127   :  { %v4892_v24 = vmov 0.0   ;;  %vm440_vm1 = vcmask 785664   ;;  %vm4893_vm2 = vmmov 0   ;;  %s4894_s30 = smov 88   ;;  %s4895_s7 = smov 96   ;;  %vm447_vm3 = vcmask 64512  }
 0x128   :  { %4112 = vmatprep.subr.mxu0 %v4892_v24  ;;  %4114 = vmatprep.mubr.msk.f32.mxu0 %vm4893_vm2, %v4892_v24  ;;  %s4896_s16 = smov 120   ;;  %s4897_s25 = smov 80   ;;  %v250_v43 = vld [vmem:[#allocation9] sm:$0xff]  ;;  %vm1394_vm4 = vcmask 130112   ;;  %vm1561_vm5 = vcmask 195712   ;;  %vm1728_vm6 = vcmask 261312  }
 0x129   :  { %s4898_s4 = smov 112   ;;  %s4899_s5 = smov 72   ;;  %vm3754_vm7 = vcmask 523264  }
 0x12a   :  { %s4901_s28 = smov 64   ;;  %s4902_s9 = smov 56  }
 0x12b   :  { %v251_v0 = vld [vmem:[%s5745_s17] sm:$0xff]  ;;  %v252_v1 = vld [vmem:[%s5745_s17 + $0x8] sm:$0xff]  ;;  %v253_v2 = vld [vmem:[%s5745_s17 + $0x10] sm:$0xff]  ;;  %s4903_s15 = smov 48   ;;  %s4904_s2 = smov 40  }
 0x12c   :  { %v4346_v3 = vpack.c.bf16 %v252_v1, %v251_v0  ;;  %v254_v4 = vld [vmem:[%s5745_s17 + $0x18] sm:$0xff]  ;;  %v346_v7 = vld [vmem:[%s5746_s11] sm:$0xff]  ;;  %v347_v8 = vld [vmem:[%s5746_s11 + $0x8] sm:$0xff]  ;;  %s4900_s17 = smov 104   ;;  %s4905_s0 = smov 16  }
 0x12d   :  { %v4350_v6 = vpack.c.bf16 %v254_v4, %v253_v2  ;;  %v4354_v9 = vpack.c.bf16 %v347_v8, %v346_v7  ;;  %v348_v10 = vld [vmem:[%s5746_s11 + $0x10] sm:$0xff]  ;;  %v349_v11 = vld [vmem:[%s5746_s11 + $0x18] sm:$0xff] }
 0x12e   :  { %4347 = vmatprep.subr.bf16.mxu1 %v4346_v3  ;;  %v4358_v13 = vpack.c.bf16 %v349_v11, %v348_v10 }
 0x12f   :  { %4349 = vmatpush3.bf16.msra.mxu1 %v4346_v3 }
 0x130   :  { %4351 = vmatprep.subr.bf16.mxu1 %v4350_v6 }
 0x133   :  { %4353 = vmatpush3.bf16.msra.mxu1 %v4350_v6 }
 0x134   :  { %4355 = vmatprep.subr.bf16.mxu1 %v4354_v9 }
 0x136   :  { %4099 = vmatmul.mubr.msk.f32.vlgmr.msra.gmra.mrb[0].mxu1 %vm262_vm0, %v5241_v12 }
 0x137   :  { %4357 = vmatpush3.bf16.msra.mxu1 %v4354_v9  ;;  %4109 = vmatprep.mubr.msk.f32.mxu1 %vm262_vm0, %v5225_v5 }
 0x138   :  { %4359 = vmatprep.subr.bf16.mxu1 %v4358_v13 }
 0x13b   :  { %4361 = vmatpush3.bf16.msra.mxu1 %v4358_v13 }
 0x13c   :  { %4117 = vmatprep.subr.mxu1 %v4892_v24 }
 0x13e   :  { %4110 = vmatmul.mubr.msk.f32.vlgmr.msra.gmra.mrb[2].mxu1 %vm262_vm0, %v5241_v12 }
 0x13f   :  { %4119 = vmatprep.mubr.msk.f32.mxu1 %vm4893_vm2, %v4892_v24 }
 0x209   :  { %v4100_v15 = vpop.f32.mrb[0].mxu1 }
 0x20a   :  { %v341_v16 = vadd.f32 %v4100_v15, %v3902_v14  ;;  %v335_v17 = vpop.f32.mrb[1].mxu1 }
 0x20b   :  { %v336_v18 = vadd.f32 %v3902_v14, %v335_v17 }
 0x20c   :  { %345 = vst.msk [vmem:[#allocation2 + $0x8] sm:$0xff] %vm262_vm0, %v341_v16 }
 0x20d   :  { %344 = vst.msk [vmem:[#allocation2] sm:$0xff] %vm262_vm0, %v336_v18 }
 0x211   :  { %v4111_v20 = vpop.f32.mrb[2].mxu1 }
 0x212   :  { %v423_v21 = vpop.f32.mrb[3].mxu1  ;;  %v429_v23 = vadd.f32 %v4111_v20, %v3905_v19 }
 0x213   :  { %v424_v22 = vadd.f32 %v3905_v19, %v423_v21 }
 0x215   :  { %434 = vrot.lane.b32.xlu0 %v424_v22, %s4891_s22 }
 0x219   :  { %436 = vrot.lane.b32.xlu0 %v429_v23, %s4891_s22 }
 0x287   :  { %v435_v25 = vpop.permute.xlu0 %434 }
 0x288   :  { %441 = vst.msk [vmem:[#allocation2] sm:$0xff] %vm440_vm1, %v435_v25 }
 0x28b   :  { %v437_v26 = vpop.permute.xlu0 %436 }
 0x28c   :  { %442 = vst.msk [vmem:[#allocation2 + $0x8] sm:$0xff] %vm440_vm1, %v437_v26 }
 0x28f   :  { %v5261_v27 = vld [vmem:[#allocation2] sm:$0xff] }
 0x290   :  { %602 = vrot.lane.b32.xlu0 %v5261_v27, %s4894_s30 }
 0x293   :  { %v5265_v28 = vld [vmem:[#allocation2 + $0x8] sm:$0xff] }
 0x294   :  { %524 = vrot.lane.b32.xlu1 %v5265_v28, %s4895_s7  ;;  %600 = vrot.lane.b32.xlu0 %v5261_v27, %s4896_s16 }
 0x298   :  { %680 = vrot.lane.b32.xlu1 %v5265_v28, %s4894_s30  ;;  %758 = vrot.lane.b32.xlu0 %v5261_v27, %s4897_s25 }
 0x29c   :  { %678 = vrot.lane.b32.xlu1 %v5265_v28, %s4896_s16  ;;  %756 = vrot.lane.b32.xlu0 %v5261_v27, %s4898_s4 }
 0x2a0   :  { %914 = vrot.lane.b32.xlu0 %v5261_v27, %s4899_s5  ;;  %445 = vrot.lane.b32.xlu1 %v5261_v27, %s4895_s7 }
 0x2a4   :  { %912 = vrot.lane.b32.xlu0 %v5261_v27, %s4900_s17  ;;  %836 = vrot.lane.b32.xlu1 %v5265_v28, %s4897_s25 }
 0x2a8   :  { %834 = vrot.lane.b32.xlu1 %v5265_v28, %s4898_s4 }
 0x2ac   :  { %992 = vrot.lane.b32.xlu1 %v5265_v28, %s4899_s5 }
 0x2b0   :  { %990 = vrot.lane.b32.xlu1 %v5265_v28, %s4900_s17 }
 0x302   :  { %v603_v29 = vpop.permute.xlu0 %602 }
 0x306   :  { %v525_v30 = vpop.permute.xlu1 %524  ;;  %v601_v31 = vpop.permute.xlu0 %600 }
 0x307   :  { %4118 = vmatpush3.xpose.msk.msra.mxu1 %vm447_vm3, %v525_v30 }
 0x308   :  { %4127 = vmatprep.subr.mxu1 %v4892_v24 }
 0x30a   :  { %4120 = vmatmul.mubr.msk.f32.vlgmr.msra.gmra.mrb[4].mxu1 %vm447_vm3, %v5265_v28  ;;  %v681_v32 = vpop.permute.xlu1 %680  ;;  %v759_v34 = vpop.permute.xlu0 %758 }
 0x30b   :  { %4128 = vmatpush3.xpose.msk.msra.mxu1 %vm447_vm3, %v681_v32  ;;  %4129 = vmatprep.mubr.msk.f32.mxu1 %vm4893_vm2, %v4892_v24 }
 0x30c   :  { %4137 = vmatprep.subr.mxu1 %v4892_v24 }
 0x30e   :  { %v679_v33 = vpop.permute.xlu1 %678  ;;  %v757_v36 = vpop.permute.xlu0 %756 }
 0x30f   :  { %4130 = vmatmul.mubr.msk.f32.vlgmr.msra.gmra.mrb[6].mxu1 %vm447_vm3, %v679_v33 }
 0x310   :  { %4139 = vmatprep.mubr.msk.f32.mxu1 %vm4893_vm2, %v4892_v24 }
 0x312   :  { %v446_v35 = vpop.permute.xlu1 %445  ;;  %v915_v39 = vpop.permute.xlu0 %914 }
 0x313   :  { %4113 = vmatpush3.xpose.msk.msra.mxu0 %vm447_vm3, %v446_v35 }
 0x314   :  { %4122 = vmatprep.subr.mxu0 %v4892_v24 }
 0x316   :  { %4115 = vmatmul.mubr.msk.f32.vlgmr.msra.gmra.mrb[0].mxu0 %vm447_vm3, %v5261_v27  ;;  %v837_v37 = vpop.permute.xlu1 %836  ;;  %v913_v41 = vpop.permute.xlu0 %912 }
 0x317   :  { %4123 = vmatpush3.xpose.msk.msra.mxu0 %vm447_vm3, %v603_v29  ;;  %4138 = vmatpush3.xpose.msk.msra.mxu1 %vm447_vm3, %v837_v37 }
 0x318   :  { %4124 = vmatprep.mubr.msk.f32.mxu0 %vm4893_vm2, %v4892_v24  ;;  %4132 = vmatprep.subr.mxu0 %v4892_v24 }
 0x319   :  { %4147 = vmatprep.subr.mxu1 %v4892_v24 }
 0x31a   :  { %4125 = vmatmul.mubr.msk.f32.vlgmr.msra.gmra.mrb[2].mxu0 %vm447_vm3, %v601_v31  ;;  %v835_v38 = vpop.permute.xlu1 %834 }
 0x31b   :  { %4133 = vmatpush3.xpose.msk.msra.mxu0 %vm447_vm3, %v759_v34  ;;  %4140 = vmatmul.mubr.msk.f32.vlgmr.msra.gmra.mrb[8].mxu1 %vm447_vm3, %v835_v38 }
 0x31c   :  { %4134 = vmatprep.mubr.msk.f32.mxu0 %vm4893_vm2, %v4892_v24  ;;  %4142 = vmatprep.subr.mxu0 %v4892_v24 }
 0x31d   :  { %4149 = vmatprep.mubr.msk.f32.mxu1 %vm4893_vm2, %v4892_v24 }
 0x31e   :  { %4135 = vmatmul.mubr.msk.f32.vlgmr.msra.gmra.mrb[4].mxu0 %vm447_vm3, %v757_v36  ;;  %v993_v40 = vpop.permute.xlu1 %992 }
 0x31f   :  { %4143 = vmatpush3.xpose.msk.msra.mxu0 %vm447_vm3, %v915_v39  ;;  %4148 = vmatpush3.xpose.msk.msra.mxu1 %vm447_vm3, %v993_v40 }
 0x320   :  { %4144 = vmatprep.mubr.msk.f32.mxu0 %vm4893_vm2, %v4892_v24  ;;  %4152 = vmatprep.subr.mxu0 %v4892_v24 }
 0x321   :  { %4157 = vmatprep.subr.mxu1 %v4892_v24 }
 0x322   :  { %4145 = vmatmul.mubr.msk.f32.vlgmr.msra.gmra.mrb[6].mxu0 %vm447_vm3, %v913_v41  ;;  %v991_v42 = vpop.permute.xlu1 %990 }
 0x323   :  { %4150 = vmatmul.mubr.msk.f32.vlgmr.msra.gmra.mrb[10].mxu1 %vm447_vm3, %v991_v42  ;;  %4154 = vmatprep.mubr.msk.f32.mxu0 %vm4893_vm2, %v4892_v24 }
 0x324   :  { %4159 = vmatprep.mubr.msk.f32.mxu1 %vm4893_vm2, %v4892_v24 }
 0x3dd   :  { %v596_v44 = vpop.f32.mrb[4].mxu1 }
 0x3de   :  { %v597_v45 = vadd.f32 %v596_v44, %v250_v43  ;;  %v4121_v46 = vpop.f32.mrb[5].mxu1 }
 0x3e0   :  { %v1071_v47 = vsel %vm447_vm3, %v597_v45, -inf }
 0x3e1   :  { %1072 = vmax.xlane.f32.xlu1 %v1071_v47 }
 0x3e2   :  { %v752_v48 = vpop.f32.mrb[6].mxu1 }
 0x3e3   :  { %v4131_v49 = vpop.f32.mrb[7].mxu1  ;;  %v753_v59 = vadd.f32 %v752_v48, %v250_v43 }
 0x3e5   :  { %v1077_v1 = vsel %vm447_vm3, %v753_v59, -inf }
 0x3e9   :  { %v518_v50 = vpop.f32.mrb[0].mxu0 }
 0x3ea   :  { %v519_v51 = vadd.f32 %v518_v50, %v250_v43  ;;  %v4116_v52 = vpop.f32.mrb[1].mxu0 }
 0x3ec   :  { %v1068_v53 = vsel %vm447_vm3, %v519_v51, -inf }
 0x3ed   :  { %1069 = vmax.xlane.f32.xlu0 %v1068_v53  ;;  %v674_v54 = vpop.f32.mrb[2].mxu0 }
 0x3ee   :  { %v675_v55 = vadd.f32 %v674_v54, %v250_v43  ;;  %v4126_v56 = vpop.f32.mrb[3].mxu0  ;;  %v908_v57 = vpop.f32.mrb[8].mxu1 }
 0x3ef   :  { %v4141_v58 = vpop.f32.mrb[9].mxu1  ;;  %v909_v0 = vadd.f32 %v908_v57, %v250_v43 }
 0x3f0   :  { %v1074_v60 = vsel %vm447_vm3, %v675_v55, -inf }
 0x3f1   :  { %1075 = vmax.xlane.f32.xlu0 %v1074_v60  ;;  %v830_v61 = vpop.f32.mrb[4].mxu0  ;;  %v1083_v11 = vsel %vm447_vm3, %v909_v0, -inf }
 0x3f2   :  { %v831_v62 = vadd.f32 %v830_v61, %v250_v43  ;;  %v4136_v63 = vpop.f32.mrb[5].mxu0 }
 0x3f4   :  { %v1080_v2 = vsel %vm447_vm3, %v831_v62, -inf }
 0x3f5   :  { %1078 = vmax.xlane.f32.xlu0 %v1077_v1  ;;  %1081 = vmax.xlane.f32.xlu1 %v1080_v2  ;;  %v986_v3 = vpop.f32.mrb[6].mxu0 }
 0x3f6   :  { %v987_v4 = vadd.f32 %v986_v3, %v250_v43  ;;  %v4146_v6 = vpop.f32.mrb[7].mxu0  ;;  %v1064_v7 = vpop.f32.mrb[10].mxu1 }
 0x3f7   :  { %v4151_v8 = vpop.f32.mrb[11].mxu1  ;;  %v1065_v9 = vadd.f32 %v1064_v7, %v250_v43 }
 0x3f8   :  { %v1086_v10 = vsel %vm447_vm3, %v987_v4, -inf }
 0x3f9   :  { %1087 = vmax.xlane.f32.xlu1 %v1086_v10  ;;  %1084 = vmax.xlane.f32.xlu0 %v1083_v11  ;;  %v1089_v13 = vsel %vm447_vm3, %v1065_v9, -inf }
 0x3fd   :  { %1090 = vmax.xlane.f32.xlu0 %v1089_v13 }
 0x40a   :  { %1156 = vrot.lane.b32.xlu1 %v5261_v27, %s4901_s28 }
 0x40e   :  { %1314 = vrot.lane.b32.xlu1 %v5261_v27, %s4902_s9 }
 0x412   :  { %1398 = vrot.lane.b32.xlu1 %v5265_v28, %s4902_s9 }
 0x413   :  { %1235 = vrot.lane.b32.xlu0 %v5265_v28, %s4901_s28 }
 0x416   :  { %1565 = vrot.lane.b32.xlu1 %v5265_v28, %s4903_s15 }
 0x417   :  { %1481 = vrot.lane.b32.xlu0 %v5261_v27, %s4903_s15 }
 0x46e   :  { %v1073_v14 = vpop.xlane.xlu1 %1072 }
 0x46f   :  { %v1093_v15 = vsub.f32 %v597_v45, %v1073_v14 }
 0x471   :  { %v1102_v16 = vmul.f32 1.442695, %v1093_v15 }
 0x473   :  { %4451 = vpow2.f32 %v1102_v16 }
 0x47a   :  { %v1070_v17 = vpop.xlane.xlu0 %1069 }
 0x47b   :  { %v1092_v18 = vsub.f32 %v519_v51, %v1070_v17 }
 0x47d   :  { %v5355_v19 = vpop.eup %4451  ;;  %v1100_v20 = vmul.f32 1.442695, %v1092_v18 }
 0x47e   :  { %v1076_v21 = vpop.xlane.xlu0 %1075  ;;  %v1119_v22 = vsel %vm447_vm3, %v5355_v19, 0.0 }
 0x47f   :  { %4453 = vpow2.f32 %v1100_v20  ;;  %v1094_v23 = vsub.f32 %v675_v55, %v1076_v21  ;;  %1120 = vadd.xlane.f32.xlu0 %v1119_v22 }
 0x481   :  { %v1104_v25 = vmul.f32 1.442695, %v1094_v23 }
 0x482   :  { %v1079_v26 = vpop.xlane.xlu0 %1078  ;;  %v1082_v29 = vpop.xlane.xlu1 %1081 }
 0x483   :  { %4455 = vpow2.f32 %v1104_v25  ;;  %v1095_v30 = vsub.f32 %v753_v59, %v1079_v26  ;;  %v1096_v31 = vsub.f32 %v831_v62, %v1082_v29 }
 0x485   :  { %v1106_v32 = vmul.f32 1.442695, %v1095_v30  ;;  %v1108_v33 = vmul.f32 1.442695, %v1096_v31 }
 0x486   :  { %v1085_v34 = vpop.xlane.xlu0 %1084  ;;  %v1088_v35 = vpop.xlane.xlu1 %1087 }
 0x487   :  { %4457 = vpow2.f32 %v1106_v32  ;;  %v1097_v36 = vsub.f32 %v909_v0, %v1085_v34  ;;  %v1098_v37 = vsub.f32 %v987_v4, %v1088_v35  ;;  %v1815_v32 = vld [vmem:[%s5706_s8] sm:$0xff] }
 0x488   :  { %4459 = vpow2.f32 %v1108_v33  ;;  %v1816_v33 = vld [vmem:[%s5706_s8 + $0x8] sm:$0xff] }
 0x489   :  { %v4454_v38 = vpop.eup %4453  ;;  %v1110_v39 = vmul.f32 1.442695, %v1097_v36  ;;  %v1112_v40 = vmul.f32 1.442695, %v1098_v37  ;;  %v4362_v35 = vpack.c.bf16 %v1816_v33, %v1815_v32  ;;  %v1817_v36 = vld [vmem:[%s5706_s8 + $0x10] sm:$0xff]  ;;  %v1818_v37 = vld [vmem:[%s5706_s8 + $0x18] sm:$0xff] }
 0x48a   :  { %v1091_v41 = vpop.xlane.xlu0 %1090  ;;  %v1157_v42 = vpop.permute.xlu1 %1156  ;;  %v1116_v43 = vsel %vm447_vm3, %v4454_v38, 0.0  ;;  %s4906_s8 = smov 24  }
 0x48b   :  { %4461 = vpow2.f32 %v1110_v39  ;;  %v1099_v44 = vsub.f32 %v1065_v9, %v1091_v41  ;;  %1117 = vadd.xlane.f32.xlu1 %v1116_v43  ;;  %4153 = vmatpush3.msra.mxu0 %v1157_v42  ;;  %v4366_v39 = vpack.c.bf16 %v1818_v37, %v1817_v36 }
 0x48c   :  { %4463 = vpow2.f32 %v1112_v40  ;;  %4162 = vmatprep.subr.mxu0 %v4892_v24 }
 0x48d   :  { %v4456_v45 = vpop.eup %4455  ;;  %v1114_v46 = vmul.f32 1.442695, %v1099_v44 }
 0x48e   :  { %v1236_v47 = vpop.permute.xlu0 %1235  ;;  %v1122_v48 = vsel %vm447_vm3, %v4456_v45, 0.0  ;;  %v1315_v59 = vpop.permute.xlu1 %1314 }
 0x48f   :  { %4465 = vpow2.f32 %v1114_v46  ;;  %1123 = vadd.xlane.f32.xlu1 %v1122_v48  ;;  %4158 = vmatpush3.msra.mxu1 %v1236_v47 }
 0x490   :  { %4167 = vmatprep.subr.mxu1 %v4892_v24 }
 0x491   :  { %v4458_v49 = vpop.eup %4457 }
 0x492   :  { %v4460_v50 = vpop.eup %4459  ;;  %v1125_v51 = vsel %vm447_vm3, %v4458_v49, 0.0  ;;  %v1482_v60 = vpop.permute.xlu0 %1481 }
 0x493   :  { %1126 = vadd.xlane.f32.xlu0 %v1125_v51  ;;  %v1128_v52 = vsel %vm447_vm3, %v4460_v50, 0.0  ;;  %v1399_v62 = vpop.permute.xlu1 %1398 }
 0x494   :  { %1129 = vadd.xlane.f32.xlu1 %v1128_v52 }
 0x495   :  { %v4462_v53 = vpop.eup %4461 }
 0x496   :  { %v4464_v54 = vpop.eup %4463  ;;  %v1131_v55 = vsel %vm447_vm3, %v4462_v53, 0.0 }
 0x497   :  { %1132 = vadd.xlane.f32.xlu0 %v1131_v55  ;;  %v1134_v56 = vsel %vm447_vm3, %v4464_v54, 0.0  ;;  %v1566_v63 = vpop.permute.xlu1 %1565 }
 0x498   :  { %1135 = vadd.xlane.f32.xlu1 %v1134_v56 }
 0x499   :  { %v5367_v57 = vpop.eup %4465 }
 0x49a   :  { %v1137_v58 = vsel %vm447_vm3, %v5367_v57, 0.0 }
 0x49b   :  { %1138 = vadd.xlane.f32.xlu0 %v1137_v58  ;;  %v3932_v58 = vld [vmem:[#allocation15] ss:$0 sm:$0xff] }
 0x4a9   :  { %1732 = vrot.lane.b32.xlu1 %v5265_v28, %s4904_s2 }
 0x4b1   :  { %1648 = vrot.lane.b32.xlu0 %v5261_v27, %s4904_s2 }
 0x50c   :  { %v1121_v61 = vpop.xlane.xlu0 %1120 }
 0x50d   :  { %4467 = vrcp.f32 %v1121_v61 }
 0x517   :  { %v4468_v0 = vpop.eup %4467 }
 0x518   :  { %v1143_v1 = vmul.f32 %v4468_v0, %v5355_v19  ;;  %v1118_v2 = vpop.xlane.xlu1 %1117 }
 0x519   :  { %4469 = vrcp.f32 %v1118_v2 }
 0x51a   :  { %4160 = vmatmul.mubr.msk.f32.vlgmr.msra.gmra.mrb[12].mxu1 %vm447_vm3, %v1143_v1 }
 0x51b   :  { %4168 = vmatpush3.msra.mxu1 %v1399_v62  ;;  %4169 = vmatprep.mubr.msk.f32.mxu1 %vm4893_vm2, %v4892_v24 }
 0x51c   :  { %v1124_v28 = vpop.xlane.xlu1 %1123  ;;  %4177 = vmatprep.subr.mxu1 %v4892_v24 }
 0x51d   :  { %4471 = vrcp.f32 %v1124_v28  ;;  %v2043_v28 = vld [vmem:[#allocation18] sm:$0xff] }
 0x520   :  { %v1127_v27 = vpop.xlane.xlu0 %1126 }
 0x521   :  { %4473 = vrcp.f32 %v1127_v27  ;;  %v1130_v3 = vpop.xlane.xlu1 %1129  ;;  %v2044_v27 = vld [vmem:[#allocation18 + $0x8] sm:$0xff] }
 0x522   :  { %4475 = vrcp.f32 %v1130_v3  ;;  %v2045_v3 = vld [vmem:[#allocation18 + $0x10] sm:$0xff] }
 0x523   :  { %v4470_v4 = vpop.eup %4469 }
 0x524   :  { %v1141_v6 = vmul.f32 %v4470_v4, %v4454_v38  ;;  %v1133_v7 = vpop.xlane.xlu0 %1132  ;;  %v4378_v4 = vpack.c.bf16 %v2044_v27, %v2043_v28 }
 0x525   :  { %4477 = vrcp.f32 %v1133_v7  ;;  %v1136_v8 = vpop.xlane.xlu1 %1135  ;;  %v246_v7 = vld [vmem:[#allocation7] sm:$0xff] }
 0x526   :  { %4479 = vrcp.f32 %v1136_v8  ;;  %4155 = vmatmul.mubr.msk.f32.vlgmr.msra.gmra.mrb[8].mxu0 %vm447_vm3, %v1141_v6  ;;  %v2046_v6 = vld [vmem:[#allocation18 + $0x18] sm:$0xff] }
 0x527   :  { %v4472_v9 = vpop.eup %4471  ;;  %4163 = vmatpush3.msra.mxu0 %v1315_v59  ;;  %4164 = vmatprep.mubr.msk.f32.mxu0 %vm4893_vm2, %v4892_v24  ;;  %v4382_v8 = vpack.c.bf16 %v2046_v6, %v2045_v3 }
 0x528   :  { %v1145_v10 = vmul.f32 %v4472_v9, %v4456_v45  ;;  %v1139_v11 = vpop.xlane.xlu0 %1138  ;;  %4172 = vmatprep.subr.mxu0 %v4892_v24 }
 0x529   :  { %4481 = vrcp.f32 %v1139_v11  ;;  %v1733_v22 = vpop.permute.xlu1 %1732 }
 0x52a   :  { %4165 = vmatmul.mubr.msk.f32.vlgmr.msra.gmra.mrb[10].mxu0 %vm447_vm3, %v1145_v10 }
 0x52b   :  { %v4474_v13 = vpop.eup %4473  ;;  %4173 = vmatpush3.msra.mxu0 %v1482_v60  ;;  %4174 = vmatprep.mubr.msk.f32.mxu0 %vm4893_vm2, %v4892_v24 }
 0x52c   :  { %v4476_v14 = vpop.eup %4475  ;;  %v1147_v15 = vmul.f32 %v4474_v13, %v4458_v49  ;;  %4182 = vmatprep.subr.mxu0 %v4892_v24  ;;  %v1649_v17 = vpop.permute.xlu0 %1648 }
 0x52d   :  { %v1149_v16 = vmul.f32 %v4476_v14, %v4460_v50 }
 0x52e   :  { %4170 = vmatmul.mubr.msk.f32.vlgmr.msra.gmra.mrb[14].mxu1 %vm447_vm3, %v1147_v15 }
 0x52f   :  { %v4478_v18 = vpop.eup %4477  ;;  %4175 = vmatmul.mubr.msk.f32.vlgmr.msra.gmra.mrb[12].mxu0 %vm447_vm3, %v1149_v16  ;;  %4178 = vmatpush3.msra.mxu1 %v1566_v63 }
 0x530   :  { %v4480_v19 = vpop.eup %4479  ;;  %v1151_v20 = vmul.f32 %v4478_v18, %v4462_v53  ;;  %4183 = vmatpush3.msra.mxu0 %v1649_v17  ;;  %4179 = vmatprep.mubr.msk.f32.mxu1 %vm4893_vm2, %v4892_v24 }
 0x531   :  { %v1153_v21 = vmul.f32 %v4480_v19, %v4464_v54  ;;  %4184 = vmatprep.mubr.msk.f32.mxu0 %vm4893_vm2, %v4892_v24  ;;  %4187 = vmatprep.subr.mxu1 %v4892_v24  ;;  %v1949_v19 = vld [vmem:[%s5708_s10] sm:$0xff] }
 0x532   :  { %4180 = vmatmul.mubr.msk.f32.vlgmr.msra.gmra.mrb[16].mxu1 %vm447_vm3, %v1151_v20  ;;  %4363 = vmatprep.subr.bf16.mxu0 %v4362_v35  ;;  %v1950_v20 = vld [vmem:[%s5708_s10 + $0x8] sm:$0xff] }
 0x533   :  { %v4482_v23 = vpop.eup %4481  ;;  %4185 = vmatmul.mubr.msk.f32.vlgmr.msra.gmra.mrb[14].mxu0 %vm447_vm3, %v1153_v21  ;;  %4188 = vmatpush3.msra.mxu1 %v1733_v22  ;;  %v4370_v21 = vpack.c.bf16 %v1950_v20, %v1949_v19  ;;  %v1951_v22 = vld [vmem:[%s5708_s10 + $0x10] sm:$0xff] }
 0x534   :  { %v1155_v25 = vmul.f32 %v4482_v23, %v5367_v57  ;;  %4189 = vmatprep.mubr.msk.f32.mxu1 %vm4893_vm2, %v4892_v24  ;;  %4365 = vmatpush3.bf16.msra.mxu0 %v4362_v35  ;;  %v1952_v23 = vld [vmem:[%s5708_s10 + $0x18] sm:$0xff]  ;;  %v1936_v35 = vlaneseq }
 0x535   :  { %4367 = vmatprep.subr.bf16.mxu0 %v4366_v39  ;;  %4371 = vmatprep.subr.bf16.mxu1 %v4370_v21 }
 0x536   :  { %4190 = vmatmul.mubr.msk.f32.vlgmr.msra.gmra.mrb[18].mxu1 %vm447_vm3, %v1155_v25  ;;  %v4374_v25 = vpack.c.bf16 %v1952_v23, %v1951_v22 }
 0x537   :  { %4373 = vmatpush3.bf16.msra.mxu1 %v4370_v21 }
 0x538   :  { %4369 = vmatpush3.bf16.msra.mxu0 %v4366_v39  ;;  %4375 = vmatprep.subr.bf16.mxu1 %v4374_v25  ;;  %v5455_v39 = vshrl.u32 %v1936_v35, 7 }
 0x539   :  { %4379 = vmatprep.subr.bf16.mxu0 %v4378_v4 }
 0x53b   :  { %4377 = vmatpush3.bf16.msra.mxu1 %v4374_v25 }
 0x53c   :  { %4225 = vmatprep.subr.mxu1 %v4892_v24 }
 0x5ed   :  { %v1307_v26 = vpop.f32.mrb[12].mxu1 }
 0x5ee   :  { %1311 = vst.msk [vmem:[#allocation3 + $0x8] sm:$0xff] %vm447_vm3, %v1307_v26  ;;  %v4161_v29 = vpop.f32.mrb[13].mxu1  ;;  %v3938_v26 = vld [vmem:[#allocation19] ss:$0 sm:$0xff] }
 0x5f9   :  { %v1228_v30 = vpop.f32.mrb[8].mxu0 }
 0x5fa   :  { %1232 = vst.msk [vmem:[#allocation3] sm:$0xff] %vm447_vm3, %v1228_v30  ;;  %v4156_v31 = vpop.f32.mrb[9].mxu0 }
 0x5fd   :  { %v1386_v34 = vpop.f32.mrb[10].mxu0 }
 0x5fe   :  { %1391 = vrot.lane.b32.xlu0 %v1386_v34, %s4878_s27  ;;  %v4166_v38 = vpop.f32.mrb[11].mxu0 }
 0x601   :  { %v1470_v40 = vpop.f32.mrb[14].mxu1 }
 0x602   :  { %v1553_v41 = vpop.f32.mrb[12].mxu0  ;;  %1475 = vrot.lane.b32.xlu1 %v1470_v40, %s4878_s27  ;;  %v4171_v42 = vpop.f32.mrb[15].mxu1 }
 0x603   :  { %1558 = vrot.lane.b32.xlu0 %v1553_v41, %s4905_s0  ;;  %v4176_v43 = vpop.f32.mrb[13].mxu0  ;;  %v1938_v41 = vsub.s32 0, %v5455_v39  ;;  %v5461_v42 = vld [vmem:[%s5718_s20] sm:$0x7] }
 0x604   :  { %v5466_v43 = vld [vmem:[%s5719_s21] sm:$0x7] }
 0x605   :  { %v1637_v44 = vpop.f32.mrb[16].mxu1 }
 0x606   :  { %v1720_v45 = vpop.f32.mrb[14].mxu0  ;;  %1642 = vrot.lane.b32.xlu1 %v1637_v44, %s4905_s0  ;;  %v4181_v46 = vpop.f32.mrb[17].mxu1  ;;  %v1939_v44 = vrot.slane %v5461_v42, %v1938_v41 }
 0x607   :  { %1725 = vrot.lane.b32.xlu0 %v1720_v45, %s4906_s8  ;;  %v4186_v47 = vpop.f32.mrb[15].mxu0 }
 0x608   :  { %v1945_v47 = vrot.slane %v5466_v43, %v1938_v41 }
 0x609   :  { %v1804_v48 = vpop.f32.mrb[18].mxu1 }
 0x60a   :  { %1809 = vrot.lane.b32.xlu1 %v1804_v48, %s4906_s8  ;;  %v4191_v49 = vpop.f32.mrb[19].mxu1 }
 0x670   :  { %v1392_v50 = vpop.permute.xlu0 %1391 }
 0x671   :  { %1395 = vst.msk [vmem:[#allocation3] sm:$0xff] %vm1394_vm4, %v1392_v50 }
 0x674   :  { %v1476_v51 = vpop.permute.xlu1 %1475 }
 0x675   :  { %v1559_v52 = vpop.permute.xlu0 %1558  ;;  %1478 = vst.msk [vmem:[#allocation3 + $0x8] sm:$0xff] %vm1394_vm4, %v1476_v51 }
 0x676   :  { %1562 = vst.msk [vmem:[#allocation3] sm:$0xff] %vm1561_vm5, %v1559_v52 }
 0x678   :  { %v1643_v53 = vpop.permute.xlu1 %1642 }
 0x679   :  { %v1726_v54 = vpop.permute.xlu0 %1725  ;;  %1645 = vst.msk [vmem:[#allocation3 + $0x8] sm:$0xff] %vm1561_vm5, %v1643_v53 }
 0x67a   :  { %1729 = vst.msk [vmem:[#allocation3] sm:$0xff] %vm1728_vm6, %v1726_v54  ;;  %v3935_v54 = vld [vmem:[#allocation16] ss:$0 sm:$0xff] }
 0x67c   :  { %v1810_v55 = vpop.permute.xlu1 %1809 }
 0x67d   :  { %1812 = vst.msk [vmem:[#allocation3 + $0x8] sm:$0xff] %vm1728_vm6, %v1810_v55 }
 0x681   :  { %v1813_v56 = vld [vmem:[#allocation3] sm:$0xff] }
 0x682   :  { %4200 = vmatprep.mubr.msk.f32.mxu0 %vm262_vm0, %v1813_v56 }
 0x684   :  { %v1814_v57 = vld [vmem:[#allocation3 + $0x8] sm:$0xff] }
 0x685   :  { %4201 = vmatmul.mubr.msk.f32.vlgmr.msra.gmra.mrb[16].mxu0 %vm262_vm0, %v1814_v57 }
 0x686   :  { %4222 = vmatprep.mubr.msk.f32.mxu0 %vm262_vm0, %v246_v7  ;;  %4381 = vmatpush3.bf16.msra.mxu0 %v4378_v4 }
 0x687   :  { %4383 = vmatprep.subr.bf16.mxu0 %v4382_v8 }
 0x68a   :  { %4385 = vmatpush3.bf16.msra.mxu0 %v4382_v8 }
 0x68b   :  { %4235 = vmatprep.subr.mxu0 %v4892_v24 }
 0x758   :  { %v4202_v59 = vpop.f32.mrb[16].mxu0 }
 0x759   :  { %v1904_v60 = vadd.f32 %v4202_v59, %v3932_v58  ;;  %v1898_v61 = vpop.f32.mrb[17].mxu0 }
 0x75a   :  { %v1899_v62 = vadd.f32 %v3932_v58, %v1898_v61 }
 0x75b   :  { %v1908_v63 = vadd.f32 %v1904_v60, %v5241_v12 }
 0x75c   :  { %v1907_v0 = vadd.f32 %v1899_v62, %v5225_v5  ;;  %v247_v5 = vld [vmem:[#allocation7 + $0x8] sm:$0xff] }
 0x75d   :  { %v1912_v1 = vsel %vm262_vm0, %v1908_v63, 0.0  ;;  %4223 = vmatmul.mubr.msk.f32.vlgmr.msra.gmra.mrb[18].mxu0 %vm262_vm0, %v247_v5 }
 0x75e   :  { %1913 = vadd.xlane.f32.xlu1 %v1912_v1  ;;  %v1909_v2 = vsel %vm262_vm0, %v1907_v0, 0.0  ;;  %4237 = vmatprep.mubr.msk.f32.mxu0 %vm4893_vm2, %v4892_v24 }
 0x75f   :  { %1910 = vadd.xlane.f32.xlu0 %v1909_v2 }
 0x7eb   :  { %v1914_v12 = vpop.xlane.xlu1 %1913 }
 0x7ec   :  { %v1917_v9 = vmul.f32 0.03125, %v1914_v12  ;;  %v1911_v10 = vpop.xlane.xlu0 %1910 }
 0x7ed   :  { %v1916_v11 = vmul.f32 0.03125, %v1911_v10 }
 0x7ee   :  { %v1919_v13 = vsub.f32 %v1908_v63, %v1917_v9 }
 0x7ef   :  { %v1918_v14 = vsub.f32 %v1907_v0, %v1916_v11 }
 0x7f0   :  { %v1921_v17 = vmul.f32 %v1919_v13, %v1919_v13 }
 0x7f1   :  { %v1920_v15 = vmul.f32 %v1918_v14, %v1918_v14 }
 0x7f2   :  { %v1925_v18 = vsel %vm262_vm0, %v1921_v17, 0.0 }
 0x7f3   :  { %v1922_v16 = vsel %vm262_vm0, %v1920_v15, 0.0 }
 0x7f4   :  { %1923 = vadd.xlane.f32.xlu0 %v1922_v16 }
 0x7f8   :  { %1926 = vadd.xlane.f32.xlu0 %v1925_v18 }
 0x830   :  { %v4224_v29 = vpop.f32.mrb[18].mxu0 }
 0x831   :  { %v2132_v30 = vadd.f32 %v4224_v29, %v3938_v26  ;;  %v2126_v31 = vpop.f32.mrb[19].mxu0 }
 0x832   :  { %v2127_v32 = vadd.f32 %v3938_v26, %v2126_v31 }
 0x833   :  { %2139 = vrot.lane.b32.xlu0 %v2132_v30, %s4891_s22 }
 0x834   :  { %2137 = vrot.lane.b32.xlu1 %v2127_v32, %s4891_s22 }
 0x881   :  { %v1924_v33 = vpop.xlane.xlu0 %1923 }
 0x882   :  { %v1928_v34 = vmul.f32 0.03125, %v1924_v33 }
 0x884   :  { %v1930_v36 = vadd.f32 1e-05, %v1928_v34 }
 0x885   :  { %v1927_v37 = vpop.xlane.xlu0 %1926 }
 0x886   :  { %4483 = vrsqrt.f32 %v1930_v36  ;;  %v1929_v38 = vmul.f32 0.03125, %v1927_v37 }
 0x888   :  { %v1931_v40 = vadd.f32 1e-05, %v1929_v38 }
 0x88a   :  { %4485 = vrsqrt.f32 %v1931_v40 }
 0x890   :  { %v4484_v45 = vpop.eup %4483 }
 0x891   :  { %v1934_v46 = vmul.f32 %v4484_v45, %v1918_v14 }
 0x893   :  { %v1940_v48 = vmul.f32 %v1939_v44, %v1934_v46 }
 0x894   :  { %v4486_v49 = vpop.eup %4485 }
 0x895   :  { %v1935_v50 = vmul.f32 %v4486_v49, %v1919_v13  ;;  %v5470_v51 = vadd.f32 %v1945_v47, %v1940_v48  ;;  %v1948_v13 = vld [vmem:[#allocation10] sm:$0xff] }
 0x897   :  { %v1941_v52 = vmul.f32 %v1939_v44, %v1935_v50  ;;  %4211 = vmatprep.mubr.msk.f32.mxu1 %vm262_vm0, %v5470_v51 }
 0x899   :  { %v5474_v53 = vadd.f32 %v1945_v47, %v1941_v52 }
 0x89b   :  { %4212 = vmatmul.mubr.msk.f32.vlgmr.msra.gmra.mrb[20].mxu1 %vm262_vm0, %v5474_v53 }
 0x89c   :  { %4227 = vmatprep.mubr.msk.f32.mxu1 %vm4893_vm2, %v4892_v24 }
 0x8a5   :  { %v2140_v58 = vpop.permute.xlu0 %2139 }
 0x8a6   :  { %v2138_v60 = vpop.permute.xlu1 %2137 }
 0x96e   :  { %v4213_v55 = vpop.f32.mrb[20].mxu1 }
 0x96f   :  { %v2038_v56 = vadd.f32 %v4213_v55, %v3935_v54  ;;  %v2032_v57 = vpop.f32.mrb[21].mxu1 }
 0x970   :  { %v2033_v59 = vadd.f32 %v3935_v54, %v2032_v57 }
 0x971   :  { %2042 = vst.msk [vmem:[#allocation2 + $0x8] sm:$0xff] %vm262_vm0, %v2038_v56 }
 0x972   :  { %2041 = vst.msk [vmem:[#allocation2] sm:$0xff] %vm262_vm0, %v2033_v59 }
 0x973   :  { %2144 = vst.msk [vmem:[#allocation2 + $0x8] sm:$0xff] %vm440_vm1, %v2140_v58  ;;  %2143 = vst.msk [vmem:[#allocation2] sm:$0xff] %vm440_vm1, %v2138_v60 }
 0x97a   :  { %v5484_v61 = vld [vmem:[#allocation2 + $0x8] sm:$0xff]  ;;  %v5488_v62 = vld [vmem:[#allocation2] sm:$0xff] }
 0x97b   :  { %2225 = vrot.lane.b32.xlu1 %v5484_v61, %s4895_s7  ;;  %2303 = vrot.lane.b32.xlu0 %v5488_v62, %s4894_s30 }
 0x97f   :  { %2381 = vrot.lane.b32.xlu1 %v5484_v61, %s4894_s30  ;;  %2301 = vrot.lane.b32.xlu0 %v5488_v62, %s4896_s16 }
 0x983   :  { %2147 = vrot.lane.b32.xlu1 %v5488_v62, %s4895_s7  ;;  %2459 = vrot.lane.b32.xlu0 %v5488_v62, %s4897_s25 }
 0x987   :  { %2379 = vrot.lane.b32.xlu1 %v5484_v61, %s4896_s16  ;;  %2457 = vrot.lane.b32.xlu0 %v5488_v62, %s4898_s4 }
 0x98b   :  { %2537 = vrot.lane.b32.xlu1 %v5484_v61, %s4897_s25  ;;  %2615 = vrot.lane.b32.xlu0 %v5488_v62, %s4899_s5 }
 0x98f   :  { %2535 = vrot.lane.b32.xlu1 %v5484_v61, %s4898_s4  ;;  %2613 = vrot.lane.b32.xlu0 %v5488_v62, %s4900_s17 }
 0x993   :  { %2693 = vrot.lane.b32.xlu1 %v5484_v61, %s4899_s5 }
 0x997   :  { %2691 = vrot.lane.b32.xlu1 %v5484_v61, %s4900_s17 }
 0x9ed   :  { %v2226_v63 = vpop.permute.xlu1 %2225  ;;  %v2304_v0 = vpop.permute.xlu0 %2303 }
 0x9ee   :  { %4236 = vmatpush3.xpose.msk.msra.mxu0 %vm447_vm3, %v2304_v0 }
 0x9ef   :  { %4245 = vmatprep.subr.mxu0 %v4892_v24 }
 0x9f1   :  { %v2382_v1 = vpop.permute.xlu1 %2381  ;;  %v2302_v2 = vpop.permute.xlu0 %2301 }
 0x9f2   :  { %4238 = vmatmul.mubr.msk.f32.vlgmr.msra.gmra.mrb[20].mxu0 %vm447_vm3, %v2302_v2 }
 0x9f3   :  { %4247 = vmatprep.mubr.msk.f32.mxu0 %vm4893_vm2, %v4892_v24 }
 0x9f5   :  { %v2148_v28 = vpop.permute.xlu1 %2147  ;;  %v2460_v27 = vpop.permute.xlu0 %2459 }
 0x9f6   :  { %4226 = vmatpush3.xpose.msk.msra.mxu1 %vm447_vm3, %v2148_v28  ;;  %4246 = vmatpush3.xpose.msk.msra.mxu0 %vm447_vm3, %v2460_v27 }
 0x9f7   :  { %4230 = vmatprep.subr.mxu1 %v4892_v24  ;;  %4255 = vmatprep.subr.mxu0 %v4892_v24 }
 0x9f9   :  { %4228 = vmatmul.mubr.msk.f32.vlgmr.msra.gmra.mrb[22].mxu1 %vm447_vm3, %v5488_v62  ;;  %v2380_v3 = vpop.permute.xlu1 %2379  ;;  %v2458_v4 = vpop.permute.xlu0 %2457 }
 0x9fa   :  { %4231 = vmatpush3.xpose.msk.msra.mxu1 %vm447_vm3, %v2226_v63  ;;  %4232 = vmatprep.mubr.msk.f32.mxu1 %vm4893_vm2, %v4892_v24 }
 0x9fb   :  { %4248 = vmatmul.mubr.msk.f32.vlgmr.msra.gmra.mrb[22].mxu0 %vm447_vm3, %v2458_v4  ;;  %4240 = vmatprep.subr.mxu1 %v4892_v24 }
 0x9fc   :  { %4257 = vmatprep.mubr.msk.f32.mxu0 %vm4893_vm2, %v4892_v24 }
 0x9fd   :  { %4233 = vmatmul.mubr.msk.f32.vlgmr.msra.gmra.mrb[24].mxu1 %vm447_vm3, %v5484_v61  ;;  %v2538_v6 = vpop.permute.xlu1 %2537  ;;  %v2616_v7 = vpop.permute.xlu0 %2615 }
 0x9fe   :  { %4241 = vmatpush3.xpose.msk.msra.mxu1 %vm447_vm3, %v2382_v1  ;;  %4242 = vmatprep.mubr.msk.f32.mxu1 %vm4893_vm2, %v4892_v24 }
 0x9ff   :  { %4256 = vmatpush3.xpose.msk.msra.mxu0 %vm447_vm3, %v2616_v7  ;;  %4250 = vmatprep.subr.mxu1 %v4892_v24 }
 0xa00   :  { %4265 = vmatprep.subr.mxu0 %v4892_v24 }
 0xa01   :  { %4243 = vmatmul.mubr.msk.f32.vlgmr.msra.gmra.mrb[26].mxu1 %vm447_vm3, %v2380_v3  ;;  %v2536_v8 = vpop.permute.xlu1 %2535  ;;  %v2614_v5 = vpop.permute.xlu0 %2613 }
 0xa02   :  { %4251 = vmatpush3.xpose.msk.msra.mxu1 %vm447_vm3, %v2538_v6  ;;  %4252 = vmatprep.mubr.msk.f32.mxu1 %vm4893_vm2, %v4892_v24 }
 0xa03   :  { %4258 = vmatmul.mubr.msk.f32.vlgmr.msra.gmra.mrb[24].mxu0 %vm447_vm3, %v2614_v5  ;;  %4260 = vmatprep.subr.mxu1 %v4892_v24 }
 0xa04   :  { %4267 = vmatprep.mubr.msk.f32.mxu0 %vm4893_vm2, %v4892_v24 }
 0xa05   :  { %4253 = vmatmul.mubr.msk.f32.vlgmr.msra.gmra.mrb[28].mxu1 %vm447_vm3, %v2536_v8  ;;  %v2694_v12 = vpop.permute.xlu1 %2693 }
 0xa06   :  { %4261 = vmatpush3.xpose.msk.msra.mxu1 %vm447_vm3, %v2694_v12  ;;  %4262 = vmatprep.mubr.msk.f32.mxu1 %vm4893_vm2, %v4892_v24 }
 0xa07   :  { %4270 = vmatprep.subr.mxu1 %v4892_v24 }
 0xa09   :  { %v2692_v9 = vpop.permute.xlu1 %2691 }
 0xa0a   :  { %4263 = vmatmul.mubr.msk.f32.vlgmr.msra.gmra.mrb[30].mxu1 %vm447_vm3, %v2692_v9 }
 0xa0b   :  { %4272 = vmatprep.mubr.msk.f32.mxu1 %vm4893_vm2, %v4892_v24 }
 0xac5   :  { %v2375_v10 = vpop.f32.mrb[20].mxu0 }
 0xac6   :  { %v4239_v11 = vpop.f32.mrb[21].mxu0  ;;  %v2376_v18 = vadd.f32 %v2375_v10, %v1948_v13 }
 0xac8   :  { %v2775_v29 = vsel %vm447_vm3, %v2376_v18, -inf }
 0xacc   :  { %v2219_v14 = vpop.f32.mrb[22].mxu1 }
 0xacd   :  { %v2220_v15 = vadd.f32 %v2219_v14, %v1948_v13  ;;  %v4229_v16 = vpop.f32.mrb[23].mxu1 }
 0xace   :  { %v2531_v17 = vpop.f32.mrb[22].mxu0 }
 0xacf   :  { %v4249_v19 = vpop.f32.mrb[23].mxu0  ;;  %v2769_v20 = vsel %vm447_vm3, %v2220_v15, -inf  ;;  %v2532_v25 = vadd.f32 %v2531_v17, %v1948_v13 }
 0xad0   :  { %2770 = vmax.xlane.f32.xlu0 %v2769_v20  ;;  %v2297_v21 = vpop.f32.mrb[24].mxu1 }
 0xad1   :  { %v2298_v22 = vadd.f32 %v2297_v21, %v1948_v13  ;;  %v4234_v23 = vpop.f32.mrb[25].mxu1  ;;  %v2781_v37 = vsel %vm447_vm3, %v2532_v25, -inf }
 0xad3   :  { %v2772_v26 = vsel %vm447_vm3, %v2298_v22, -inf }
 0xad4   :  { %2773 = vmax.xlane.f32.xlu1 %v2772_v26  ;;  %v2453_v30 = vpop.f32.mrb[26].mxu1  ;;  %2776 = vmax.xlane.f32.xlu0 %v2775_v29 }
 0xad5   :  { %v2454_v31 = vadd.f32 %v2453_v30, %v1948_v13  ;;  %v4244_v32 = vpop.f32.mrb[27].mxu1 }
 0xad6   :  { %v2687_v33 = vpop.f32.mrb[24].mxu0 }
 0xad7   :  { %v2688_v34 = vadd.f32 %v2687_v33, %v1948_v13  ;;  %v4259_v35 = vpop.f32.mrb[25].mxu0  ;;  %v2778_v36 = vsel %vm447_vm3, %v2454_v31, -inf }
 0xad8   :  { %v2609_v38 = vpop.f32.mrb[28].mxu1  ;;  %2779 = vmax.xlane.f32.xlu0 %v2778_v36  ;;  %2782 = vmax.xlane.f32.xlu1 %v2781_v37 }
 0xad9   :  { %v2610_v40 = vadd.f32 %v2609_v38, %v1948_v13  ;;  %v4254_v41 = vpop.f32.mrb[29].mxu1  ;;  %v2787_v45 = vsel %vm447_vm3, %v2688_v34, -inf }
 0xadb   :  { %v2784_v44 = vsel %vm447_vm3, %v2610_v40, -inf }
 0xadc   :  { %2785 = vmax.xlane.f32.xlu0 %v2784_v44  ;;  %2788 = vmax.xlane.f32.xlu1 %v2787_v45 }
 0xadd   :  { %v2765_v46 = vpop.f32.mrb[30].mxu1 }
 0xade   :  { %v2766_v47 = vadd.f32 %v2765_v46, %v1948_v13  ;;  %v4264_v48 = vpop.f32.mrb[31].mxu1 }
 0xae0   :  { %v2790_v49 = vsel %vm447_vm3, %v2766_v47, -inf }
 0xae1   :  { %2791 = vmax.xlane.f32.xlu0 %v2790_v49 }
 0xaed   :  { %2857 = vrot.lane.b32.xlu1 %v5488_v62, %s4901_s28 }
 0xaf1   :  { %3015 = vrot.lane.b32.xlu1 %v5488_v62, %s4902_s9 }
 0xaf5   :  { %3098 = vrot.lane.b32.xlu1 %v5484_v61, %s4902_s9 }
 0xaf7   :  { %2936 = vrot.lane.b32.xlu0 %v5484_v61, %s4901_s28 }
 0xaf9   :  { %3264 = vrot.lane.b32.xlu1 %v5484_v61, %s4903_s15 }
 0xafb   :  { %3181 = vrot.lane.b32.xlu0 %v5488_v62, %s4903_s15 }
 0xb5d   :  { %v2771_v50 = vpop.xlane.xlu0 %2770 }
 0xb5e   :  { %v2793_v52 = vsub.f32 %v2220_v15, %v2771_v50 }
 0xb60   :  { %v2801_v54 = vmul.f32 1.442695, %v2793_v52 }
 0xb61   :  { %v2774_v55 = vpop.xlane.xlu1 %2773  ;;  %v2777_v56 = vpop.xlane.xlu0 %2776 }
 0xb62   :  { %4487 = vpow2.f32 %v2801_v54  ;;  %v2794_v57 = vsub.f32 %v2298_v22, %v2774_v55  ;;  %v2795_v58 = vsub.f32 %v2376_v18, %v2777_v56 }
 0xb64   :  { %v2803_v59 = vmul.f32 1.442695, %v2794_v57  ;;  %v2805_v60 = vmul.f32 1.442695, %v2795_v58 }
 0xb65   :  { %v2783_v63 = vpop.xlane.xlu1 %2782  ;;  %v2780_v0 = vpop.xlane.xlu0 %2779 }
 0xb66   :  { %4489 = vpow2.f32 %v2803_v59  ;;  %v2797_v1 = vsub.f32 %v2532_v25, %v2783_v63  ;;  %v2796_v2 = vsub.f32 %v2454_v31, %v2780_v0 }
 0xb67   :  { %4491 = vpow2.f32 %v2805_v60 }
 0xb68   :  { %v2809_v28 = vmul.f32 1.442695, %v2797_v1  ;;  %v2807_v27 = vmul.f32 1.442695, %v2796_v2 }
 0xb69   :  { %v2789_v3 = vpop.xlane.xlu1 %2788  ;;  %v2786_v4 = vpop.xlane.xlu0 %2785 }
 0xb6a   :  { %4493 = vpow2.f32 %v2809_v28  ;;  %v2799_v6 = vsub.f32 %v2688_v34, %v2789_v3  ;;  %v2798_v7 = vsub.f32 %v2610_v40, %v2786_v4 }
 0xb6b   :  { %4495 = vpow2.f32 %v2807_v27 }
 0xb6c   :  { %v4488_v8 = vpop.eup %4487  ;;  %v2813_v5 = vmul.f32 1.442695, %v2799_v6  ;;  %v2811_v12 = vmul.f32 1.442695, %v2798_v7 }
 0xb6d   :  { %v2858_v9 = vpop.permute.xlu1 %2857  ;;  %v2817_v10 = vsel %vm447_vm3, %v4488_v8, 0.0 }
 0xb6e   :  { %4497 = vpow2.f32 %v2813_v5  ;;  %4266 = vmatpush3.msra.mxu0 %v2858_v9  ;;  %2818 = vadd.xlane.f32.xlu1 %v2817_v10  ;;  %v2792_v11 = vpop.xlane.xlu0 %2791  ;;  %v3514_v5 = vld [vmem:[#allocation21 + $0x8] sm:$0xff] }
 0xb6f   :  { %4499 = vpow2.f32 %v2811_v12  ;;  %v2800_v13 = vsub.f32 %v2766_v47, %v2792_v11  ;;  %4275 = vmatprep.subr.mxu0 %v4892_v24  ;;  %v3516_v11 = vld [vmem:[#allocation21 + $0x18] sm:$0xff] }
 0xb70   :  { %v4490_v14 = vpop.eup %4489 }
 0xb71   :  { %v4492_v15 = vpop.eup %4491  ;;  %v2815_v16 = vmul.f32 1.442695, %v2800_v13  ;;  %v2820_v17 = vsel %vm447_vm3, %v4490_v14, 0.0  ;;  %v3016_v33 = vpop.permute.xlu1 %3015 }
 0xb72   :  { %2821 = vadd.xlane.f32.xlu0 %v2820_v17  ;;  %v2823_v18 = vsel %vm447_vm3, %v4492_v15, 0.0  ;;  %v2937_v19 = vpop.permute.xlu0 %2936 }
 0xb73   :  { %4501 = vpow2.f32 %v2815_v16  ;;  %2824 = vadd.xlane.f32.xlu1 %v2823_v18  ;;  %4271 = vmatpush3.msra.mxu1 %v2937_v19 }
 0xb74   :  { %v4494_v20 = vpop.eup %4493  ;;  %4280 = vmatprep.subr.mxu1 %v4892_v24 }
 0xb75   :  { %v4496_v21 = vpop.eup %4495  ;;  %v2829_v22 = vsel %vm447_vm3, %v4494_v20, 0.0  ;;  %v3099_v34 = vpop.permute.xlu1 %3098 }
 0xb76   :  { %v2826_v23 = vsel %vm447_vm3, %v4496_v21, 0.0  ;;  %v3182_v36 = vpop.permute.xlu0 %3181 }
 0xb77   :  { %2830 = vadd.xlane.f32.xlu1 %v2829_v22  ;;  %2827 = vadd.xlane.f32.xlu0 %v2826_v23 }
 0xb78   :  { %v4498_v25 = vpop.eup %4497 }
 0xb79   :  { %v4500_v26 = vpop.eup %4499  ;;  %v2835_v29 = vsel %vm447_vm3, %v4498_v25, 0.0  ;;  %v3265_v35 = vpop.permute.xlu1 %3264 }
 0xb7a   :  { %v2832_v30 = vsel %vm447_vm3, %v4500_v26, 0.0 }
 0xb7b   :  { %2836 = vadd.xlane.f32.xlu1 %v2835_v29  ;;  %2833 = vadd.xlane.f32.xlu0 %v2832_v30 }
 0xb7d   :  { %v5587_v31 = vpop.eup %4501 }
 0xb7e   :  { %v2838_v32 = vsel %vm447_vm3, %v5587_v31, 0.0 }
 0xb7f   :  { %2839 = vadd.xlane.f32.xlu0 %v2838_v32 }
 0xb8c   :  { %3430 = vrot.lane.b32.xlu1 %v5484_v61, %s4904_s2 }
 0xb95   :  { %3347 = vrot.lane.b32.xlu0 %v5488_v62, %s4904_s2 }
 0xbfb   :  { %v2819_v37 = vpop.xlane.xlu1 %2818 }
 0xbfc   :  { %4503 = vrcp.f32 %v2819_v37 }
 0xbff   :  { %v2822_v38 = vpop.xlane.xlu0 %2821 }
 0xc00   :  { %v2825_v40 = vpop.xlane.xlu1 %2824  ;;  %4505 = vrcp.f32 %v2822_v38 }
 0xc01   :  { %4507 = vrcp.f32 %v2825_v40 }
 0xc04   :  { %v2831_v41 = vpop.xlane.xlu1 %2830  ;;  %v2828_v44 = vpop.xlane.xlu0 %2827 }
 0xc05   :  { %4509 = vrcp.f32 %v2831_v41 }
 0xc06   :  { %v4504_v45 = vpop.eup %4503  ;;  %4511 = vrcp.f32 %v2828_v44 }
 0xc07   :  { %v2842_v46 = vmul.f32 %v4504_v45, %v4488_v8  ;;  %v3513_v8 = vld [vmem:[#allocation21] sm:$0xff] }
 0xc08   :  { %v2837_v61 = vpop.xlane.xlu1 %2836  ;;  %v2834_v47 = vpop.xlane.xlu0 %2833  ;;  %v4386_v9 = vpack.c.bf16 %v3514_v5, %v3513_v8 }
 0xc09   :  { %4513 = vrcp.f32 %v2837_v61  ;;  %4268 = vmatmul.mubr.msk.f32.vlgmr.msra.gmra.mrb[26].mxu0 %vm447_vm3, %v2842_v46 }
 0xc0a   :  { %v4506_v62 = vpop.eup %4505  ;;  %4515 = vrcp.f32 %v2834_v47  ;;  %4276 = vmatpush3.msra.mxu0 %v3016_v33  ;;  %4277 = vmatprep.mubr.msk.f32.mxu0 %vm4893_vm2, %v4892_v24 }
 0xc0b   :  { %v4508_v48 = vpop.eup %4507  ;;  %v2844_v49 = vmul.f32 %v4506_v62, %v4490_v14  ;;  %4285 = vmatprep.subr.mxu0 %v4892_v24 }
 0xc0c   :  { %v2846_v50 = vmul.f32 %v4508_v48, %v4492_v15  ;;  %v2840_v52 = vpop.xlane.xlu0 %2839  ;;  %v3431_v2 = vpop.permute.xlu1 %3430 }
 0xc0d   :  { %4517 = vrcp.f32 %v2840_v52  ;;  %4273 = vmatmul.mubr.msk.f32.vlgmr.msra.gmra.mrb[32].mxu1 %vm447_vm3, %v2844_v49 }
 0xc0e   :  { %4278 = vmatmul.mubr.msk.f32.vlgmr.msra.gmra.mrb[28].mxu0 %vm447_vm3, %v2846_v50  ;;  %4281 = vmatpush3.msra.mxu1 %v3099_v34  ;;  %v3965_v34 = vld [vmem:[#allocation22] ss:$0 sm:$0xff] }
 0xc0f   :  { %v4510_v54 = vpop.eup %4509  ;;  %4286 = vmatpush3.msra.mxu0 %v3182_v36  ;;  %4282 = vmatprep.mubr.msk.f32.mxu1 %vm4893_vm2, %v4892_v24 }
 0xc10   :  { %v4512_v55 = vpop.eup %4511  ;;  %v2850_v56 = vmul.f32 %v4510_v54, %v4494_v20  ;;  %4287 = vmatprep.mubr.msk.f32.mxu0 %vm4893_vm2, %v4892_v24  ;;  %4290 = vmatprep.subr.mxu1 %v4892_v24  ;;  %v3348_v57 = vpop.permute.xlu0 %3347 }
 0xc11   :  { %v2848_v58 = vmul.f32 %v4512_v55, %v4496_v21  ;;  %4295 = vmatprep.subr.mxu0 %v4892_v24  ;;  %v3646_v55 = vld [vmem:[#allocation24 + $0x8] sm:$0xff] }
 0xc12   :  { %4288 = vmatmul.mubr.msk.f32.vlgmr.msra.gmra.mrb[30].mxu0 %vm447_vm3, %v2850_v56 }
 0xc13   :  { %v4514_v59 = vpop.eup %4513  ;;  %4283 = vmatmul.mubr.msk.f32.vlgmr.msra.gmra.mrb[34].mxu1 %vm447_vm3, %v2848_v58  ;;  %4296 = vmatpush3.msra.mxu0 %v3348_v57  ;;  %v3647_v57 = vld [vmem:[#allocation24 + $0x10] sm:$0xff]  ;;  %v3648_v58 = vld [vmem:[#allocation24 + $0x18] sm:$0xff] }
 0xc14   :  { %v4516_v60 = vpop.eup %4515  ;;  %v2854_v63 = vmul.f32 %v4514_v59, %v4498_v25  ;;  %4291 = vmatpush3.msra.mxu1 %v3265_v35  ;;  %4292 = vmatprep.mubr.msk.f32.mxu1 %vm4893_vm2, %v4892_v24  ;;  %v4398_v59 = vpack.c.bf16 %v3648_v58, %v3647_v57 }
 0xc15   :  { %v2852_v0 = vmul.f32 %v4516_v60, %v4500_v26  ;;  %4297 = vmatprep.mubr.msk.f32.mxu0 %vm4893_vm2, %v4892_v24  ;;  %4300 = vmatprep.subr.mxu1 %v4892_v24  ;;  %v3739_v60 = vld [vmem:[%s5716_s18] sm:$0xff] }
 0xc16   :  { %4298 = vmatmul.mubr.msk.f32.vlgmr.msra.gmra.mrb[32].mxu0 %vm447_vm3, %v2854_v63  ;;  %4387 = vmatprep.subr.bf16.mxu0 %v4386_v9  ;;  %v3740_v63 = vld [vmem:[%s5716_s18 + $0x8] sm:$0xff] }
 0xc17   :  { %v4518_v1 = vpop.eup %4517  ;;  %4293 = vmatmul.mubr.msk.f32.vlgmr.msra.gmra.mrb[36].mxu1 %vm447_vm3, %v2852_v0  ;;  %4389 = vmatpush3.bf16.msra.mxu0 %v4386_v9  ;;  %v3741_v0 = vld [vmem:[%s5716_s18 + $0x10] sm:$0xff] }
 0xc18   :  { %v2856_v28 = vmul.f32 %v4518_v1, %v5587_v31  ;;  %4301 = vmatpush3.msra.mxu1 %v3431_v2  ;;  %4302 = vmatprep.mubr.msk.f32.mxu1 %vm4893_vm2, %v4892_v24  ;;  %v3515_v24 = vld [vmem:[#allocation21 + $0x10] sm:$0xff]  ;;  %v4402_v1 = vpack.c.bf16 %v3740_v63, %v3739_v60  ;;  %v3742_v2 = vld [vmem:[%s5716_s18 + $0x18] sm:$0xff]  ;;  %v3866_v60 = vsub.s32 2, %v5455_v39 }
 0xc19   :  { %v4390_v15 = vpack.c.bf16 %v3516_v11, %v3515_v24 }
 0xc1a   :  { %v3867_v63 = vrot.slane %v5461_v42, %v3866_v60 }
 0xc1b   :  { %4303 = vmatmul.mubr.msk.f32.vlgmr.msra.gmra.mrb[38].mxu1 %vm447_vm3, %v2856_v28  ;;  %4391 = vmatprep.subr.bf16.mxu0 %v4390_v15  ;;  %v4406_v28 = vpack.c.bf16 %v3742_v2, %v3741_v0 }
 0xc1c   :  { %4393 = vmatpush3.bf16.msra.mxu0 %v4390_v15 }
 0xc1d   :  { %4403 = vmatprep.subr.bf16.mxu0 %v4402_v1 }
 0xcdc   :  { %v2929_v27 = vpop.f32.mrb[26].mxu0 }
 0xcdd   :  { %2933 = vst.msk [vmem:[#allocation3] sm:$0xff] %vm447_vm3, %v2929_v27  ;;  %v4269_v3 = vpop.f32.mrb[27].mxu0  ;;  %v3743_v27 = vld [vmem:[%s5716_s18 + $0x20] sm:$0xff] }
 0xcde   :  { %v3744_v3 = vld [vmem:[%s5716_s18 + $0x28] sm:$0xff] }
 0xce0   :  { %v3008_v4 = vpop.f32.mrb[32].mxu1 }
 0xce1   :  { %3012 = vst.msk [vmem:[#allocation3 + $0x8] sm:$0xff] %vm447_vm3, %v3008_v4  ;;  %v3087_v6 = vpop.f32.mrb[28].mxu0  ;;  %v4274_v7 = vpop.f32.mrb[33].mxu1  ;;  %v4410_v4 = vpack.c.bf16 %v3744_v3, %v3743_v27 }
 0xce2   :  { %v4279_v12 = vpop.f32.mrb[29].mxu0  ;;  %3092 = vrot.lane.b32.xlu0 %v3087_v6, %s4878_s27 }
 0xce5   :  { %v3253_v10 = vpop.f32.mrb[30].mxu0 }
 0xce6   :  { %v3170_v13 = vpop.f32.mrb[34].mxu1  ;;  %3258 = vrot.lane.b32.xlu0 %v3253_v10, %s4905_s0  ;;  %v4289_v14 = vpop.f32.mrb[31].mxu0  ;;  %v3635_v10 = vsub.s32 1, %v5455_v39 }
 0xce7   :  { %3175 = vrot.lane.b32.xlu1 %v3170_v13, %s4878_s27  ;;  %v4284_v16 = vpop.f32.mrb[35].mxu1 }
 0xce8   :  { %v3636_v24 = vrot.slane %v5461_v42, %v3635_v10  ;;  %v3642_v14 = vrot.slane %v5466_v43, %v3635_v10 }
 0xce9   :  { %v3419_v17 = vpop.f32.mrb[32].mxu0 }
 0xcea   :  { %v3336_v18 = vpop.f32.mrb[36].mxu1  ;;  %3424 = vrot.lane.b32.xlu0 %v3419_v17, %s4906_s8  ;;  %v4299_v19 = vpop.f32.mrb[33].mxu0 }
 0xceb   :  { %3341 = vrot.lane.b32.xlu1 %v3336_v18, %s4905_s0  ;;  %v4294_v20 = vpop.f32.mrb[37].mxu1 }
 0xcee   :  { %v3502_v21 = vpop.f32.mrb[38].mxu1 }
 0xcef   :  { %3507 = vrot.lane.b32.xlu1 %v3502_v21, %s4906_s8  ;;  %v4304_v22 = vpop.f32.mrb[39].mxu1  ;;  %v3745_v21 = vld [vmem:[%s5716_s18 + $0x30] sm:$0xff] }
 0xcf0   :  { %v3746_v22 = vld [vmem:[%s5716_s18 + $0x38] sm:$0xff]  ;;  %s4907_s18 = smov [#allocation27]  }
 0xd54   :  { %v3093_v23 = vpop.permute.xlu0 %3092 }
 0xd55   :  { %3095 = vst.msk [vmem:[#allocation3] sm:$0xff] %vm1394_vm4, %v3093_v23  ;;  %v4414_v23 = vpack.c.bf16 %v3746_v22, %v3745_v21 }
 0xd58   :  { %v3259_v25 = vpop.permute.xlu0 %3258 }
 0xd59   :  { %v3176_v26 = vpop.permute.xlu1 %3175  ;;  %3261 = vst.msk [vmem:[#allocation3] sm:$0xff] %vm1561_vm5, %v3259_v25  ;;  %v3968_v25 = vld [vmem:[#allocation25] ss:$0 sm:$0xff] }
 0xd5a   :  { %3178 = vst.msk [vmem:[#allocation3 + $0x8] sm:$0xff] %vm1394_vm4, %v3176_v26 }
 0xd5c   :  { %v3425_v29 = vpop.permute.xlu0 %3424 }
 0xd5d   :  { %v3342_v30 = vpop.permute.xlu1 %3341  ;;  %3427 = vst.msk [vmem:[#allocation3] sm:$0xff] %vm1728_vm6, %v3425_v29 }
 0xd5e   :  { %3344 = vst.msk [vmem:[#allocation3 + $0x8] sm:$0xff] %vm1561_vm5, %v3342_v30 }
 0xd61   :  { %v3508_v31 = vpop.permute.xlu1 %3507 }
 0xd62   :  { %3510 = vst.msk [vmem:[#allocation3 + $0x8] sm:$0xff] %vm1728_vm6, %v3508_v31 }
 0xd64   :  { %v3511_v32 = vld [vmem:[#allocation3] sm:$0xff] }
 0xd65   :  { %4313 = vmatprep.mubr.msk.f32.mxu0 %vm262_vm0, %v3511_v32 }
 0xd69   :  { %v3512_v33 = vld [vmem:[#allocation3 + $0x8] sm:$0xff] }
 0xd6a   :  { %4314 = vmatmul.mubr.msk.f32.vlgmr.msra.gmra.mrb[34].mxu0 %vm262_vm0, %v3512_v33 }
 0xd6b   :  { %4405 = vmatpush3.bf16.msra.mxu0 %v4402_v1 }
 0xd6c   :  { %4407 = vmatprep.subr.bf16.mxu0 %v4406_v28 }
 0xd6f   :  { %4409 = vmatpush3.bf16.msra.mxu0 %v4406_v28  ;;  %v3873_v28 = vrot.slane %v5466_v43, %v3866_v60 }
 0xd70   :  { %4411 = vmatprep.subr.bf16.mxu0 %v4410_v4 }
 0xd73   :  { %4413 = vmatpush3.bf16.msra.mxu0 %v4410_v4 }
 0xd74   :  { %4415 = vmatprep.subr.bf16.mxu0 %v4414_v23 }
 0xd77   :  { %4417 = vmatpush3.bf16.msra.mxu0 %v4414_v23 }
 0xe3d   :  { %v4315_v35 = vpop.f32.mrb[34].mxu0 }
 0xe3e   :  { %v3602_v36 = vadd.f32 %v4315_v35, %v3965_v34  ;;  %v3596_v37 = vpop.f32.mrb[35].mxu0 }
 0xe3f   :  { %v3597_v38 = vadd.f32 %v3965_v34, %v3596_v37  ;;  %v3971_v34 = vld [vmem:[%s5717_s19] ss:$0 sm:$0xff]  ;;  %s3883_s19 = sshll.u32 %s4907_s18, 4  ;;  %s3884_s19 = int_to_ptr.vmem [resolvable:$true] %s3883_s19 }
 0xe40   :  { %v3606_v40 = vadd.f32 %v3602_v36, %v5474_v53  ;;  %s4835_s6 = scalar_lea.vmem %s3884_s19, 256  ;;  %p4840_p1 = scmp.lt.s32.totalorder %s3884_s19, %s3884_s19 }
 0xe41   :  { %v3605_v41 = vadd.f32 %v3597_v38, %v5470_v51  ;;  %v3645_v51 = vld [vmem:[#allocation24] sm:$0xff]  ;;  %p4836_p0 = scmp.ne.s32.totalorder %s3884_s19, %s4835_s6  ;;  %p4841_p2 = scmp.lt.s32.totalorder %s4835_s6, %s4835_s6 }
 0xe42   :  { %v3610_v44 = vsel %vm262_vm0, %v3606_v40, 0.0  ;;  %v4394_v56 = vpack.c.bf16 %v3646_v55, %v3645_v51 }
 0xe43   :  { %3611 = vadd.xlane.f32.xlu1 %v3610_v44  ;;  %v3607_v45 = vsel %vm262_vm0, %v3605_v41, 0.0  ;;  %p4842_p3 = por %p4841_p2, %p4840_p1 }
 0xe44   :  { %3608 = vadd.xlane.f32.xlu0 %v3607_v45  ;;  %4395 = vmatprep.subr.bf16.mxu1 %v4394_v56 }
 0xe45   :  { %4397 = vmatpush3.bf16.msra.mxu1 %v4394_v56  ;;  %p4843_p4 = pnand %p4842_p3, %p4836_p0 }
 0xe46   :  { %4399 = vmatprep.subr.bf16.mxu1 %v4398_v59 }
 0xe49   :  { %4401 = vmatpush3.bf16.msra.mxu1 %v4398_v59 }
 0xed0   :  { %v3612_v46 = vpop.xlane.xlu1 %3611 }
 0xed1   :  { %v3614_v61 = vmul.f32 0.03125, %v3612_v46  ;;  %v3609_v47 = vpop.xlane.xlu0 %3608 }
 0xed2   :  { %v3613_v62 = vmul.f32 0.03125, %v3609_v47 }
 0xed3   :  { %v3616_v48 = vsub.f32 %v3606_v40, %v3614_v61 }
 0xed4   :  { %v3615_v49 = vsub.f32 %v3605_v41, %v3613_v62 }
 0xed5   :  { %v3618_v54 = vmul.f32 %v3616_v48, %v3616_v48 }
 0xed6   :  { %v3617_v50 = vmul.f32 %v3615_v49, %v3615_v49 }
 0xed7   :  { %v3622_v53 = vsel %vm262_vm0, %v3618_v54, 0.0 }
 0xed8   :  { %v3619_v52 = vsel %vm262_vm0, %v3617_v50, 0.0 }
 0xed9   :  { %3620 = vadd.xlane.f32.xlu0 %v3619_v52 }
 0xedd   :  { %3623 = vadd.xlane.f32.xlu0 %v3622_v53 }
 0xf66   :  { %v3621_v6 = vpop.xlane.xlu0 %3620 }
 0xf67   :  { %v3625_v7 = vmul.f32 0.03125, %v3621_v6 }
 0xf69   :  { %v3627_v8 = vadd.f32 1e-05, %v3625_v7 }
 0xf6a   :  { %v3624_v5 = vpop.xlane.xlu0 %3623 }
 0xf6b   :  { %4519 = vrsqrt.f32 %v3627_v8  ;;  %v3626_v12 = vmul.f32 0.03125, %v3624_v5 }
 0xf6d   :  { %v3628_v9 = vadd.f32 1e-05, %v3626_v12 }
 0xf6f   :  { %4521 = vrsqrt.f32 %v3628_v9 }
 0xf75   :  { %v4520_v11 = vpop.eup %4519 }
 0xf76   :  { %v3631_v13 = vmul.f32 %v4520_v11, %v3615_v49 }
 0xf78   :  { %v3637_v15 = vmul.f32 %v3636_v24, %v3631_v13 }
 0xf79   :  { %v4522_v16 = vpop.eup %4521 }
 0xf7a   :  { %v3632_v17 = vmul.f32 %v4522_v16, %v3616_v48  ;;  %v3643_v18 = vadd.f32 %v3642_v14, %v3637_v15 }
 0xf7c   :  { %v3638_v19 = vmul.f32 %v3636_v24, %v3632_v17  ;;  %4324 = vmatprep.mubr.msk.f32.mxu1 %vm262_vm0, %v3643_v18 }
 0xf7e   :  { %v3644_v20 = vadd.f32 %v3642_v14, %v3638_v19 }
 0xf80   :  { %4325 = vmatmul.mubr.msk.f32.vlgmr.msra.gmra.mrb[40].mxu1 %vm262_vm0, %v3644_v20 }
0x1053   :  { %v4326_v26 = vpop.f32.mrb[40].mxu1 }
0x1054   :  { %v3734_v29 = vadd.f32 %v4326_v26, %v3968_v25  ;;  %v3728_v30 = vpop.f32.mrb[41].mxu1 }
0x1055   :  { %v3729_v31 = vadd.f32 %v3968_v25, %v3728_v30 }
0x1056   :  { %v3738_v33 = vmax.f32 %v3734_v29, 0.0 }
0x1057   :  { %v3737_v32 = vmax.f32 %v3729_v31, 0.0 }
0x1059   :  { %4343 = vmatprep.mubr.msk.f32.mxu0 %vm3754_vm7, %v3737_v32 }
0x105a   :  { %4344 = vmatmul.mubr.msk.f32.vlgmr.msra.gmra.mrb[36].mxu0 %vm3754_vm7, %v3738_v33 }
0x112d   :  { %v4345_v35 = vpop.f32.mrb[36].mxu0 }
0x112e   :  { %v3833_v36 = vadd.f32 %v4345_v35, %v3971_v34  ;;  %v3827_v37 = vpop.f32.mrb[37].mxu0 }
0x112f   :  { %v3828_v38 = vadd.f32 %v3971_v34, %v3827_v37 }
0x1130   :  { %v3837_v40 = vadd.f32 %v3833_v36, %v3644_v20 }
0x1131   :  { %v3836_v41 = vadd.f32 %v3828_v38, %v3643_v18 }
0x1132   :  { %v3841_v44 = vsel %vm262_vm0, %v3837_v40, 0.0 }
0x1133   :  { %3842 = vadd.xlane.f32.xlu0 %v3841_v44  ;;  %v3838_v45 = vsel %vm262_vm0, %v3836_v41, 0.0 }
0x1134   :  { %3839 = vadd.xlane.f32.xlu1 %v3838_v45 }
0x11c0   :  { %v3843_v46 = vpop.xlane.xlu0 %3842 }
0x11c1   :  { %v3845_v61 = vmul.f32 0.03125, %v3843_v46  ;;  %v3840_v47 = vpop.xlane.xlu1 %3839 }
0x11c2   :  { %v3844_v62 = vmul.f32 0.03125, %v3840_v47 }
0x11c3   :  { %v3847_v48 = vsub.f32 %v3837_v40, %v3845_v61 }
0x11c4   :  { %v3846_v49 = vsub.f32 %v3836_v41, %v3844_v62 }
0x11c5   :  { %v3849_v50 = vmul.f32 %v3847_v48, %v3847_v48 }
0x11c6   :  { %v3848_v52 = vmul.f32 %v3846_v49, %v3846_v49 }
0x11c7   :  { %v3853_v54 = vsel %vm262_vm0, %v3849_v50, 0.0 }
0x11c8   :  { %3854 = vadd.xlane.f32.xlu0 %v3853_v54  ;;  %v3850_v53 = vsel %vm262_vm0, %v3848_v52, 0.0 }
0x11c9   :  { %3851 = vadd.xlane.f32.xlu1 %v3850_v53 }
0x1255   :  { %v3855_v51 = vpop.xlane.xlu0 %3854 }
0x1256   :  { %v3857_v55 = vmul.f32 0.03125, %v3855_v51  ;;  %v3852_v56 = vpop.xlane.xlu1 %3851 }
0x1257   :  { %v3856_v57 = vmul.f32 0.03125, %v3852_v56 }
0x1258   :  { %v3859_v58 = vadd.f32 1e-05, %v3857_v55 }
0x1259   :  { %v3858_v59 = vadd.f32 1e-05, %v3856_v57 }
0x125a   :  { %4523 = vrsqrt.f32 %v3859_v58 }
0x125b   :  { %4525 = vrsqrt.f32 %v3858_v59 }
0x1264   :  { %v4524_v0 = vpop.eup %4523 }
0x1265   :  { %v4526_v1 = vpop.eup %4525  ;;  %v3863_v2 = vmul.f32 %v4524_v0, %v3847_v48 }
0x1266   :  { %v3862_v27 = vmul.f32 %v4526_v1, %v3846_v49 }
0x1267   :  { %v3869_v3 = vmul.f32 %v3867_v63, %v3863_v2 }
0x1268   :  { %v3868_v4 = vmul.f32 %v3867_v63, %v3862_v27 }
0x1269   :  { %v3875_v6 = vadd.f32 %v3873_v28, %v3869_v3 }
0x126a   :  { %v3874_v7 = vadd.f32 %v3873_v28, %v3868_v4 }
0x126b   :  { %3877 = vst.msk [vmem:[#allocation27 + $0x8] sm:$0xff] %vm262_vm0, %v3875_v6 }
0x126c   :  { %3876 = vst.msk [vmem:[#allocation27] sm:$0xff] %vm262_vm0, %v3874_v7 }
0x126d   :  { %4846 = shalt.err (!%p4843_p4)
}
0x126e   :  { %s5747_s11 = sld [smem:[#allocation44_spill]] }
0x1274   :  { %s4847_s3 = scalar_lea.hbm %s5747_s11, 256 }
0x1275   :  { %p4848_p5 = scmp.ne.s32.totalorder %s5747_s11, %s4847_s3  ;;  %p4851_p6 = scmp.lt.u32.totalorder %s4847_s3, %s5747_s11 }
0x1277   :  { %p4853_p7 = pnand %p4851_p6, %p4848_p5 }
0x1279   :  { %4856 = shalt.err (!%p4853_p7)
}
0x127a   :  { %3889 = dma.vmem_to_hbm [thread:$0]  %s3884_s19, 256, %s5747_s11, [#allocation6], %s5742_s23, %s5742_s23, %s4878_s27  }
0x127b   :  { %4873 = dma.done.wait [#allocation6], 256  }
0x127c   :  { %4874 = vsyncadd [#allocation6], 4294967040 }
0x127d   :  { %3893 = vsyncpa [#allocation5], 1 }
0x127e   :  { %3894 = vsyncpa [#allocation8], 1 }
0x127f   :  { %3895 = vsyncpa [#allocation11], 1 }
0x1280   :  { %3896 = vsyncpa [#allocation14], 1 }
0x1281   :  { %3897 = vsyncpa [#allocation17], 1 }
0x1282   :  { %3898 = vsyncpa [#allocation20], 1 }
0x1283   :  { %3899 = vsyncpa [#allocation23], 1 }
0x1284   :  { %3900 = vsyncpa [#allocation26], 1 }
0x1285   :  { %3901 = vsyncpa [#allocation6], 1 }

</bundles_post_ra>
